<compile_context>
chip_gen: v7x
topology: tpu7x:2x2x1
jax: 0.10.0
libtpu: 0.0.40
codegen_flags: <defaults>
</compile_context>

<pallas_src>
import functools

import jax
import jax.numpy as jnp
from jax.experimental import pallas as pl
from jax.experimental.pallas import tpu as pltpu


def _bottleneck_kernel(H, W, Cin, P, Cout,
                       x_ref, w1_ref, w2_ref, w3_ref,
                       s1_ref, b1_ref, b2_ref, b3_ref,
                       out_ref, pad_ref):
    """One grid step == one image (N is the grid axis)."""
    # ---- bn1 (folded, eval mode) + relu: f32 on the VPU ----
    a1 = jnp.maximum(x_ref[0] * s1_ref[...].reshape(1, 1, Cin)
                     + b1_ref[...].reshape(1, 1, Cin), 0.0)        # (H, W, Cin)

    # ---- conv1 (1x1) == channel matmul on the MXU; bn2 scale pre-folded ----
    h1 = jnp.dot(a1.reshape(H * W, Cin).astype(jnp.bfloat16), w1_ref[...],
                 preferred_element_type=jnp.float32)               # (H*W, P)
    a2 = jnp.maximum(h1 + b2_ref[...], 0.0)                        # (H*W, P)

    # ---- conv2 (3x3, padding=1, stride=1) via im2col matmuls ----
    # Zero only the two halo rows; the left/right halo columns are written as
    # part of the full-width interior store (offset on the leading H axis
    # only), so there is no per-step full-buffer zero fill.
    zrow = jnp.zeros((W + 2, P), jnp.float32)
    pad_ref[0] = zrow
    pad_ref[H + 1] = zrow
    zcol = jnp.zeros((H, 1, P), jnp.float32)
    pad_ref[1:H + 1, :, :] = jnp.concatenate(
        [zcol, a2.reshape(H, W, P), zcol], axis=1)                 # (H, W+2, P)

    # Column bands (kw = 0, 1, 2), cast to bf16 once here.
    bands = [pad_ref[:, kw:kw + W, :].astype(jnp.bfloat16) for kw in range(3)]
    h2 = jnp.zeros((H * W, P), jnp.float32)
    for kh in range(3):            # 3 matmuls with K = 3*P (bn3 scale folded)
        slab = jnp.concatenate([bands[0][kh:kh + H],
                                bands[1][kh:kh + H],
                                bands[2][kh:kh + H]], axis=-1)     # (H, W, 3P)
        h2 = h2 + jnp.dot(slab.reshape(H * W, 3 * P), w2_ref[kh],
                          preferred_element_type=jnp.float32)
    a3 = jnp.maximum(h2 + b3_ref[...], 0.0)                        # (H*W, P)

    # ---- conv3 (1x1 expansion P -> Cout) + residual add (downsample=None) ----
    h3 = jnp.dot(a3.astype(jnp.bfloat16), w3_ref[...],
                 preferred_element_type=jnp.float32)               # (H*W, Cout)
    out_ref[0] = (h3.reshape(H, W, Cout) + x_ref[0]).astype(out_ref.dtype)


def bottleneck_nhwc(x_nhwc, w1, w2, w3, s1, b1, s2, b2, s3, b3):
    """x_nhwc: (N, H, W, Cin) f32; w1:(Cin,P), w2:(3,3,P,P) HWIO, w3:(P,Cout)."""
    N, H, W, Cin = x_nhwc.shape
    P = w1.shape[1]
    Cout = w3.shape[1]
    assert Cin == Cout, "no-downsample residual requires inplanes == 4*planes"

    # Fold BN2's scale into conv1's output columns and BN3's scale into
    # conv2's output channels (exact); keep the shifts as additive biases.
    # Cast MXU operands to bf16 (accumulation stays f32 inside the kernel).
    w1f = (w1 * s2.reshape(1, P)).astype(jnp.bfloat16)                   # (Cin, P)
    w2f = (w2 * s3.reshape(1, 1, 1, P)).reshape(3, 3 * P, P).astype(jnp.bfloat16)
    w3f = w3.astype(jnp.bfloat16)                                        # (P, Cout)

    kernel = functools.partial(_bottleneck_kernel, H, W, Cin, P, Cout)
    return pl.pallas_call(
        kernel,
        out_shape=jax.ShapeDtypeStruct((N, H, W, Cout), x_nhwc.dtype),
        grid_spec=pltpu.PrefetchScalarGridSpec(
            num_scalar_prefetch=0,
            grid=(N,),
            in_specs=[
                pl.BlockSpec((1, H, W, Cin), lambda n: (n, 0, 0, 0)),    # x
                pl.BlockSpec((Cin, P), lambda n: (0, 0)),                # w1*s2
                pl.BlockSpec((3, 3 * P, P), lambda n: (0, 0, 0)),        # w2*s3
                pl.BlockSpec((P, Cout), lambda n: (0, 0)),               # w3
                pl.BlockSpec((1, Cin), lambda n: (0, 0)),                # bn1 scale
                pl.BlockSpec((1, Cin), lambda n: (0, 0)),                # bn1 shift
                pl.BlockSpec((1, P), lambda n: (0, 0)),                  # bn2 shift
                pl.BlockSpec((1, P), lambda n: (0, 0)),                  # bn3 shift
            ],
            out_specs=pl.BlockSpec((1, H, W, Cout), lambda n: (n, 0, 0, 0)),
            scratch_shapes=[pltpu.VMEM((H + 2, W + 2, P), jnp.float32)],
        ),
        compiler_params=pltpu.CompilerParams(
            dimension_semantics=("parallel",),
            vmem_limit_bytes=32 * 1024 * 1024),
    )(x_nhwc, w1f, w2f, w3f, s1, b1, b2, b3)


def _reference_nhwc(x, w1, w2, w3, s1, b1, s2, b2, s3, b3):
    """Plain-JAX (XLA) f32 reference for correctness checking."""
    dn = ('NHWC', 'HWIO', 'NHWC')
    hi = jax.lax.Precision.HIGHEST
    Cin = x.shape[-1]
    P = w1.shape[1]
    a1 = jnp.maximum(x * s1.reshape(1, 1, 1, Cin) + b1.reshape(1, 1, 1, Cin), 0.0)
    h1 = jax.lax.conv_general_dilated(a1, w1.reshape(1, 1, Cin, P), (1, 1),
                                      'VALID', dimension_numbers=dn, precision=hi)
    a2 = jnp.maximum(h1 * s2.reshape(1, 1, 1, P) + b2.reshape(1, 1, 1, P), 0.0)
    h2 = jax.lax.conv_general_dilated(a2, w2, (1, 1), 'SAME',
                                      dimension_numbers=dn, precision=hi)
    a3 = jnp.maximum(h2 * s3.reshape(1, 1, 1, P) + b3.reshape(1, 1, 1, P), 0.0)
    h3 = jax.lax.conv_general_dilated(a3, w3.reshape(1, 1, P, w3.shape[1]),
                                      (1, 1), 'VALID', dimension_numbers=dn,
                                      precision=hi)
    return h3 + x


if __name__ == "__main__":
    # Small shapes consistent with the module: inplanes == planes*4 so the
    # residual add works without a downsample branch (downsample=None).
    # Channel counts chosen so the output lane dim (Cout = 128) is lane-dense.
    N, planes, H, W = 2, 32, 16, 16
    inplanes = planes * 4            # 128 == Cout
    eps = 1e-5

    key = jax.random.PRNGKey(0)
    keys = jax.random.split(key, 8)

    x_nchw = jax.random.normal(keys[0], (N, inplanes, H, W), jnp.float32)

    # Conv weights (deterministic, synthetic) in the PyTorch OIHW layout,
    # then reshaped/transposed for the NHWC kernel.
    w1_t = 0.1 * jax.random.normal(keys[1], (planes, inplanes, 1, 1), jnp.float32)
    w2_t = 0.1 * jax.random.normal(keys[2], (planes, planes, 3, 3), jnp.float32)
    w3_t = 0.1 * jax.random.normal(keys[3], (planes * 4, planes, 1, 1), jnp.float32)
    w1 = jnp.transpose(w1_t[:, :, 0, 0], (1, 0))      # (Cin, P)
    w2 = jnp.transpose(w2_t, (2, 3, 1, 0))            # (3, 3, Pin, Pout) = HWIO
    w3 = jnp.transpose(w3_t[:, :, 0, 0], (1, 0))      # (P, Cout)

    def bn_fold(k, c):
        kg, kb, km, kv = jax.random.split(k, 4)
        gamma = 1.0 + 0.1 * jax.random.normal(kg, (c,), jnp.float32)
        beta = 0.1 * jax.random.normal(kb, (c,), jnp.float32)
        mean = 0.1 * jax.random.normal(km, (c,), jnp.float32)
        var = jnp.abs(1.0 + 0.1 * jax.random.normal(kv, (c,), jnp.float32))
        scale = gamma / jnp.sqrt(var + eps)
        shift = beta - mean * scale
        return scale.reshape(1, c), shift.reshape(1, c)

    s1, b1 = bn_fold(keys[4], inplanes)
    s2, b2 = bn_fold(keys[5], planes)
    s3, b3 = bn_fold(keys[6], planes)

    # NCHW (PyTorch) -> NHWC (kernel), run kernel, back to NCHW.
    x_nhwc = jnp.transpose(x_nchw, (0, 2, 3, 1))
    out_nhwc = bottleneck_nhwc(x_nhwc, w1, w2, w3, s1, b1, s2, b2, s3, b3)
    out_nchw = jnp.transpose(out_nhwc, (0, 3, 1, 2))
    jax.block_until_ready(out_nchw)

    # Correctness check against a plain-JAX f32 reference.  Tolerance is
    # loosened because the kernel uses bf16 MXU operands (f32 accumulation).
    ref = jnp.transpose(
        _reference_nhwc(x_nhwc, w1, w2, w3, s1, b1, s2, b2, s3, b3),
        (0, 3, 1, 2))
    assert jnp.allclose(out_nchw, ref, rtol=5e-2, atol=5e-2), "mismatch vs reference"

    print("KERNEL_OK")
</pallas_src>

<mosaic_0001>
module attributes {stable_mosaic.version = 11 : i64} {
  func.func @_bottleneck_kernel(%arg0: i32, %arg1: memref<1x16x16x128xf32, #tpu.memory_space<vmem>>, %arg2: memref<128x32xbf16, #tpu.memory_space<vmem>>, %arg3: memref<3x96x32xbf16, #tpu.memory_space<vmem>>, %arg4: memref<32x128xbf16, #tpu.memory_space<vmem>>, %arg5: memref<1x128xf32, #tpu.memory_space<vmem>>, %arg6: memref<1x128xf32, #tpu.memory_space<vmem>>, %arg7: memref<1x32xf32, #tpu.memory_space<vmem>>, %arg8: memref<1x32xf32, #tpu.memory_space<vmem>>, %arg9: memref<1x16x16x128xf32, #tpu.memory_space<vmem>>, %arg10: memref<18x18x32xf32, #tpu.memory_space<vmem>>) attributes {dimension_semantics = [#tpu.dimension_semantics<parallel>], iteration_bounds = array<i64: 2>, scalar_prefetch = 0 : i64, scratch_operands = 1 : i64, tpu.core_type = #tpu.core_type<tc>, window_params = [{transform_indices = @transform_0, window_bounds = array<i64: 1, 16, 16, 128>}, {pipeline_mode = #tpu.pipeline_mode<synchronous>, transform_indices = @transform_1, window_bounds = array<i64: 128, 32>}, {pipeline_mode = #tpu.pipeline_mode<synchronous>, transform_indices = @transform_2, window_bounds = array<i64: 3, 96, 32>}, {pipeline_mode = #tpu.pipeline_mode<synchronous>, transform_indices = @transform_3, window_bounds = array<i64: 32, 128>}, {pipeline_mode = #tpu.pipeline_mode<synchronous>, transform_indices = @transform_4, window_bounds = array<i64: 1, 128>}, {pipeline_mode = #tpu.pipeline_mode<synchronous>, transform_indices = @transform_5, window_bounds = array<i64: 1, 128>}, {pipeline_mode = #tpu.pipeline_mode<synchronous>, transform_indices = @transform_6, window_bounds = array<i64: 1, 32>}, {pipeline_mode = #tpu.pipeline_mode<synchronous>, transform_indices = @transform_7, window_bounds = array<i64: 1, 32>}, {transform_indices = @transform_8, window_bounds = array<i64: 1, 16, 16, 128>}]} {
    %c0 = arith.constant 0 : index
    %c0_0 = arith.constant 0 : index
    %c0_1 = arith.constant 0 : index
    %c0_2 = arith.constant 0 : index
    %0 = vector.load %arg1[%c0, %c0_0, %c0_1, %c0_2] : memref<1x16x16x128xf32, #tpu.memory_space<vmem>>, vector<1x16x16x128xf32>
    %1 = vector.shape_cast %0 : vector<1x16x16x128xf32> to vector<16x16x128xf32>
    %c0_3 = arith.constant 0 : index
    %c0_4 = arith.constant 0 : index
    %2 = vector.load %arg5[%c0_3, %c0_4] : memref<1x128xf32, #tpu.memory_space<vmem>>, vector<1x128xf32>
    %3 = vector.shape_cast %2 : vector<1x128xf32> to vector<1x1x128xf32>
    %4 = vector.broadcast %3 : vector<1x1x128xf32> to vector<16x16x128xf32>
    %5 = arith.mulf %1, %4 : vector<16x16x128xf32>
    %c0_5 = arith.constant 0 : index
    %c0_6 = arith.constant 0 : index
    %6 = vector.load %arg6[%c0_5, %c0_6] : memref<1x128xf32, #tpu.memory_space<vmem>>, vector<1x128xf32>
    %7 = vector.shape_cast %6 : vector<1x128xf32> to vector<1x1x128xf32>
    %8 = vector.broadcast %7 : vector<1x1x128xf32> to vector<16x16x128xf32>
    %9 = arith.addf %5, %8 : vector<16x16x128xf32>
    %cst = arith.constant 0.000000e+00 : f32
    %10 = vector.broadcast %cst : f32 to vector<16x16x128xf32>
    %11 = arith.maximumf %9, %10 : vector<16x16x128xf32>
    %12 = vector.shape_cast %11 : vector<16x16x128xf32> to vector<256x128xf32>
    %13 = arith.truncf %12 : vector<256x128xf32> to vector<256x128xbf16>
    %c0_7 = arith.constant 0 : index
    %c0_8 = arith.constant 0 : index
    %14 = vector.load %arg2[%c0_7, %c0_8] : memref<128x32xbf16, #tpu.memory_space<vmem>>, vector<128x32xbf16>
    %cst_9 = arith.constant dense<0.000000e+00> : vector<256x32xf32>
    %15 = tpu.matmul %13, %14, %cst_9 {dimension_numbers = #tpu.dot_dimension_numbers<[1], [0], [0], [1], [0, 0, 1, 1], [], []>} : vector<256x128xbf16>, vector<128x32xbf16>, vector<256x32xf32> -> vector<256x32xf32>
    %c0_10 = arith.constant 0 : index
    %c0_11 = arith.constant 0 : index
    %16 = vector.load %arg7[%c0_10, %c0_11] : memref<1x32xf32, #tpu.memory_space<vmem>>, vector<1x32xf32>
    %17 = vector.broadcast %16 : vector<1x32xf32> to vector<256x32xf32>
    %18 = arith.addf %15, %17 : vector<256x32xf32>
    %cst_12 = arith.constant 0.000000e+00 : f32
    %19 = vector.broadcast %cst_12 : f32 to vector<256x32xf32>
    %20 = arith.maximumf %18, %19 : vector<256x32xf32>
    %cst_13 = arith.constant 0.000000e+00 : f32
    %21 = vector.broadcast %cst_13 : f32 to vector<18x32xf32>
    %c0_14 = arith.constant 0 : index
    %c0_15 = arith.constant 0 : index
    %c0_16 = arith.constant 0 : index
    %22 = vector.load %arg10[%c0_14, %c0_15, %c0_16] : memref<18x18x32xf32, #tpu.memory_space<vmem>>, vector<1x18x32xf32>
    %23 = vector.shape_cast %22 : vector<1x18x32xf32> to vector<18x32xf32>
    %24 = vector.shape_cast %21 : vector<18x32xf32> to vector<1x18x32xf32>
    tpu.vector_store %arg10[%c0_14, %c0_15, %c0_16], %24 {strides = array<i32>} : memref<18x18x32xf32, #tpu.memory_space<vmem>>, vector<1x18x32xf32>,
    %c17 = arith.constant 17 : index
    %c0_17 = arith.constant 0 : index
    %c0_18 = arith.constant 0 : index
    %25 = vector.load %arg10[%c17, %c0_17, %c0_18] : memref<18x18x32xf32, #tpu.memory_space<vmem>>, vector<1x18x32xf32>
    %26 = vector.shape_cast %25 : vector<1x18x32xf32> to vector<18x32xf32>
    %27 = vector.shape_cast %21 : vector<18x32xf32> to vector<1x18x32xf32>
    tpu.vector_store %arg10[%c17, %c0_17, %c0_18], %27 {strides = array<i32>} : memref<18x18x32xf32, #tpu.memory_space<vmem>>, vector<1x18x32xf32>,
    %cst_19 = arith.constant 0.000000e+00 : f32
    %28 = vector.broadcast %cst_19 : f32 to vector<16x1x32xf32>
    %29 = vector.shape_cast %20 : vector<256x32xf32> to vector<16x16x32xf32>
    %30 = tpu.concatenate %28, %29, %28 in 1 : vector<16x1x32xf32>, vector<16x16x32xf32>, vector<16x1x32xf32> -> vector<16x18x32xf32>
    %c1 = arith.constant 1 : index
    %c0_20 = arith.constant 0 : index
    %c0_21 = arith.constant 0 : index
    %31 = vector.load %arg10[%c1, %c0_20, %c0_21] : memref<18x18x32xf32, #tpu.memory_space<vmem>>, vector<16x18x32xf32>
    tpu.vector_store %arg10[%c1, %c0_20, %c0_21], %30 {strides = array<i32>} : memref<18x18x32xf32, #tpu.memory_space<vmem>>, vector<16x18x32xf32>,
    %c0_22 = arith.constant 0 : index
    %c0_23 = arith.constant 0 : index
    %c0_24 = arith.constant 0 : index
    %32 = vector.load %arg10[%c0_22, %c0_23, %c0_24] : memref<18x18x32xf32, #tpu.memory_space<vmem>>, vector<18x16x32xf32>
    %33 = arith.truncf %32 : vector<18x16x32xf32> to vector<18x16x32xbf16>
    %c0_25 = arith.constant 0 : index
    %c1_26 = arith.constant 1 : index
    %c0_27 = arith.constant 0 : index
    %34 = vector.load %arg10[%c0_25, %c1_26, %c0_27] : memref<18x18x32xf32, #tpu.memory_space<vmem>>, vector<18x16x32xf32>
    %35 = arith.truncf %34 : vector<18x16x32xf32> to vector<18x16x32xbf16>
    %c0_28 = arith.constant 0 : index
    %c2 = arith.constant 2 : index
    %c0_29 = arith.constant 0 : index
    %36 = vector.load %arg10[%c0_28, %c2, %c0_29] : memref<18x18x32xf32, #tpu.memory_space<vmem>>, vector<18x16x32xf32>
    %37 = arith.truncf %36 : vector<18x16x32xf32> to vector<18x16x32xbf16>
    %cst_30 = arith.constant 0.000000e+00 : f32
    %38 = vector.broadcast %cst_30 : f32 to vector<256x32xf32>
    %39 = vector.extract_strided_slice %33 {offsets = [0, 0, 0], sizes = [16, 16, 32], strides = [1, 1, 1]} : vector<18x16x32xbf16> to vector<16x16x32xbf16>
    %40 = vector.extract_strided_slice %35 {offsets = [0, 0, 0], sizes = [16, 16, 32], strides = [1, 1, 1]} : vector<18x16x32xbf16> to vector<16x16x32xbf16>
    %41 = vector.extract_strided_slice %37 {offsets = [0, 0, 0], sizes = [16, 16, 32], strides = [1, 1, 1]} : vector<18x16x32xbf16> to vector<16x16x32xbf16>
    %42 = tpu.concatenate %39, %40, %41 in 2 : vector<16x16x32xbf16>, vector<16x16x32xbf16>, vector<16x16x32xbf16> -> vector<16x16x96xbf16>
    %43 = vector.shape_cast %42 : vector<16x16x96xbf16> to vector<256x96xbf16>
    %c0_31 = arith.constant 0 : index
    %c0_32 = arith.constant 0 : index
    %c0_33 = arith.constant 0 : index
    %44 = vector.load %arg3[%c0_31, %c0_32, %c0_33] : memref<3x96x32xbf16, #tpu.memory_space<vmem>>, vector<1x96x32xbf16>
    %45 = vector.shape_cast %44 : vector<1x96x32xbf16> to vector<96x32xbf16>
    %cst_34 = arith.constant dense<0.000000e+00> : vector<256x32xf32>
    %46 = tpu.matmul %43, %45, %cst_34 {dimension_numbers = #tpu.dot_dimension_numbers<[1], [0], [0], [1], [0, 0, 1, 1], [], []>} : vector<256x96xbf16>, vector<96x32xbf16>, vector<256x32xf32> -> vector<256x32xf32>
    %47 = arith.addf %38, %46 : vector<256x32xf32>
    %48 = vector.extract_strided_slice %33 {offsets = [1, 0, 0], sizes = [16, 16, 32], strides = [1, 1, 1]} : vector<18x16x32xbf16> to vector<16x16x32xbf16>
    %49 = vector.extract_strided_slice %35 {offsets = [1, 0, 0], sizes = [16, 16, 32], strides = [1, 1, 1]} : vector<18x16x32xbf16> to vector<16x16x32xbf16>
    %50 = vector.extract_strided_slice %37 {offsets = [1, 0, 0], sizes = [16, 16, 32], strides = [1, 1, 1]} : vector<18x16x32xbf16> to vector<16x16x32xbf16>
    %51 = tpu.concatenate %48, %49, %50 in 2 : vector<16x16x32xbf16>, vector<16x16x32xbf16>, vector<16x16x32xbf16> -> vector<16x16x96xbf16>
    %52 = vector.shape_cast %51 : vector<16x16x96xbf16> to vector<256x96xbf16>
    %c1_35 = arith.constant 1 : index
    %c0_36 = arith.constant 0 : index
    %c0_37 = arith.constant 0 : index
    %53 = vector.load %arg3[%c1_35, %c0_36, %c0_37] : memref<3x96x32xbf16, #tpu.memory_space<vmem>>, vector<1x96x32xbf16>
    %54 = vector.shape_cast %53 : vector<1x96x32xbf16> to vector<96x32xbf16>
    %cst_38 = arith.constant dense<0.000000e+00> : vector<256x32xf32>
    %55 = tpu.matmul %52, %54, %cst_38 {dimension_numbers = #tpu.dot_dimension_numbers<[1], [0], [0], [1], [0, 0, 1, 1], [], []>} : vector<256x96xbf16>, vector<96x32xbf16>, vector<256x32xf32> -> vector<256x32xf32>
    %56 = arith.addf %47, %55 : vector<256x32xf32>
    %57 = vector.extract_strided_slice %33 {offsets = [2, 0, 0], sizes = [16, 16, 32], strides = [1, 1, 1]} : vector<18x16x32xbf16> to vector<16x16x32xbf16>
    %58 = vector.extract_strided_slice %35 {offsets = [2, 0, 0], sizes = [16, 16, 32], strides = [1, 1, 1]} : vector<18x16x32xbf16> to vector<16x16x32xbf16>
    %59 = vector.extract_strided_slice %37 {offsets = [2, 0, 0], sizes = [16, 16, 32], strides = [1, 1, 1]} : vector<18x16x32xbf16> to vector<16x16x32xbf16>
    %60 = tpu.concatenate %57, %58, %59 in 2 : vector<16x16x32xbf16>, vector<16x16x32xbf16>, vector<16x16x32xbf16> -> vector<16x16x96xbf16>
    %61 = vector.shape_cast %60 : vector<16x16x96xbf16> to vector<256x96xbf16>
    %c2_39 = arith.constant 2 : index
    %c0_40 = arith.constant 0 : index
    %c0_41 = arith.constant 0 : index
    %62 = vector.load %arg3[%c2_39, %c0_40, %c0_41] : memref<3x96x32xbf16, #tpu.memory_space<vmem>>, vector<1x96x32xbf16>
    %63 = vector.shape_cast %62 : vector<1x96x32xbf16> to vector<96x32xbf16>
    %cst_42 = arith.constant dense<0.000000e+00> : vector<256x32xf32>
    %64 = tpu.matmul %61, %63, %cst_42 {dimension_numbers = #tpu.dot_dimension_numbers<[1], [0], [0], [1], [0, 0, 1, 1], [], []>} : vector<256x96xbf16>, vector<96x32xbf16>, vector<256x32xf32> -> vector<256x32xf32>
    %65 = arith.addf %56, %64 : vector<256x32xf32>
    %c0_43 = arith.constant 0 : index
    %c0_44 = arith.constant 0 : index
    %66 = vector.load %arg8[%c0_43, %c0_44] : memref<1x32xf32, #tpu.memory_space<vmem>>, vector<1x32xf32>
    %67 = vector.broadcast %66 : vector<1x32xf32> to vector<256x32xf32>
    %68 = arith.addf %65, %67 : vector<256x32xf32>
    %cst_45 = arith.constant 0.000000e+00 : f32
    %69 = vector.broadcast %cst_45 : f32 to vector<256x32xf32>
    %70 = arith.maximumf %68, %69 : vector<256x32xf32>
    %71 = arith.truncf %70 : vector<256x32xf32> to vector<256x32xbf16>
    %c0_46 = arith.constant 0 : index
    %c0_47 = arith.constant 0 : index
    %72 = vector.load %arg4[%c0_46, %c0_47] : memref<32x128xbf16, #tpu.memory_space<vmem>>, vector<32x128xbf16>
    %cst_48 = arith.constant dense<0.000000e+00> : vector<256x128xf32>
    %73 = tpu.matmul %71, %72, %cst_48 {dimension_numbers = #tpu.dot_dimension_numbers<[1], [0], [0], [1], [0, 0, 1, 1], [], []>} : vector<256x32xbf16>, vector<32x128xbf16>, vector<256x128xf32> -> vector<256x128xf32>
    %74 = vector.shape_cast %73 : vector<256x128xf32> to vector<16x16x128xf32>
    %c0_49 = arith.constant 0 : index
    %c0_50 = arith.constant 0 : index
    %c0_51 = arith.constant 0 : index
    %c0_52 = arith.constant 0 : index
    %75 = vector.load %arg1[%c0_49, %c0_50, %c0_51, %c0_52] : memref<1x16x16x128xf32, #tpu.memory_space<vmem>>, vector<1x16x16x128xf32>
    %76 = vector.shape_cast %75 : vector<1x16x16x128xf32> to vector<16x16x128xf32>
    %77 = arith.addf %74, %76 : vector<16x16x128xf32>
    %c0_53 = arith.constant 0 : index
    %c0_54 = arith.constant 0 : index
    %c0_55 = arith.constant 0 : index
    %c0_56 = arith.constant 0 : index
    %78 = vector.load %arg9[%c0_53, %c0_54, %c0_55, %c0_56] : memref<1x16x16x128xf32, #tpu.memory_space<vmem>>, vector<1x16x16x128xf32>
    %79 = vector.shape_cast %78 : vector<1x16x16x128xf32> to vector<16x16x128xf32>
    %80 = vector.shape_cast %77 : vector<16x16x128xf32> to vector<1x16x16x128xf32>
    tpu.vector_store %arg9[%c0_53, %c0_54, %c0_55, %c0_56], %80 {strides = array<i32>} : memref<1x16x16x128xf32, #tpu.memory_space<vmem>>, vector<1x16x16x128xf32>,
    return
  }
  func.func @transform_0(%arg0: i32) -> (i32, i32, i32, i32) {
    %c0_i32 = arith.constant 0 : i32
    %c0_i32_0 = arith.constant 0 : i32
    %c0_i32_1 = arith.constant 0 : i32
    %c0_i32_2 = arith.constant 0 : i32
    return %arg0, %c0_i32, %c0_i32_0, %c0_i32_1 : i32, i32, i32, i32
  }
  func.func @transform_1(%arg0: i32) -> (i32, i32) {
    %c0_i32 = arith.constant 0 : i32
    %c0_i32_0 = arith.constant 0 : i32
    %c0_i32_1 = arith.constant 0 : i32
    return %c0_i32, %c0_i32_0 : i32, i32
  }
  func.func @transform_2(%arg0: i32) -> (i32, i32, i32) {
    %c0_i32 = arith.constant 0 : i32
    %c0_i32_0 = arith.constant 0 : i32
    %c0_i32_1 = arith.constant 0 : i32
    %c0_i32_2 = arith.constant 0 : i32
    return %c0_i32, %c0_i32_0, %c0_i32_1 : i32, i32, i32
  }
  func.func @transform_3(%arg0: i32) -> (i32, i32) {
    %c0_i32 = arith.constant 0 : i32
    %c0_i32_0 = arith.constant 0 : i32
    %c0_i32_1 = arith.constant 0 : i32
    return %c0_i32, %c0_i32_0 : i32, i32
  }
  func.func @transform_4(%arg0: i32) -> (i32, i32) {
    %c0_i32 = arith.constant 0 : i32
    %c0_i32_0 = arith.constant 0 : i32
    %c0_i32_1 = arith.constant 0 : i32
    return %c0_i32, %c0_i32_0 : i32, i32
  }
  func.func @transform_5(%arg0: i32) -> (i32, i32) {
    %c0_i32 = arith.constant 0 : i32
    %c0_i32_0 = arith.constant 0 : i32
    %c0_i32_1 = arith.constant 0 : i32
    return %c0_i32, %c0_i32_0 : i32, i32
  }
  func.func @transform_6(%arg0: i32) -> (i32, i32) {
    %c0_i32 = arith.constant 0 : i32
    %c0_i32_0 = arith.constant 0 : i32
    %c0_i32_1 = arith.constant 0 : i32
    return %c0_i32, %c0_i32_0 : i32, i32
  }
  func.func @transform_7(%arg0: i32) -> (i32, i32) {
    %c0_i32 = arith.constant 0 : i32
    %c0_i32_0 = arith.constant 0 : i32
    %c0_i32_1 = arith.constant 0 : i32
    return %c0_i32, %c0_i32_0 : i32, i32
  }
  func.func @transform_8(%arg0: i32) -> (i32, i32, i32, i32) {
    %c0_i32 = arith.constant 0 : i32
    %c0_i32_0 = arith.constant 0 : i32
    %c0_i32_1 = arith.constant 0 : i32
    %c0_i32_2 = arith.constant 0 : i32
    return %arg0, %c0_i32, %c0_i32_0, %c0_i32_1 : i32, i32, i32, i32
  }
}

</mosaic_0001>

<bundles_post_ra>
// kernel: tpu_custom_call.1
= control target key start
LH: loop header
LB: loop body
LE: loop exit
PB: predicated region body
PF: predicated region fallthrough
CT: control target
= control target key end

     0   :  { %13 = vsyncpa [#allocation4], 0  ;;  %s4088_s0 = inlined_call_operand.hbm [shape: f32[2,16,16,128], index: 0, kind: input, shape index: {}]   ;;  %s4089_s1 = inlined_call_operand.vmem [shape: bf16[128,32], index: 1, kind: input, shape index: {}]   ;;  %s4090_s2 = inlined_call_operand.vmem [shape: bf16[3,96,32], index: 2, kind: input, shape index: {}]   ;;  %s4091_s3 = inlined_call_operand.vmem [shape: bf16[32,128], index: 3, kind: input, shape index: {}]   ;;  %s4092_s4 = inlined_call_operand.vmem [shape: f32[1,128], index: 4, kind: input, shape index: {}]   ;;  %s4093_s5 = inlined_call_operand.vmem [shape: f32[1,128], index: 5, kind: input, shape index: {}]   ;;  %s4094_s6 = inlined_call_operand.vmem [shape: f32[1,32], index: 6, kind: input, shape index: {}]   ;;  %s4095_s7 = inlined_call_operand.vmem [shape: f32[1,32], index: 7, kind: input, shape index: {}]   ;;  %s4096_s8 = inlined_call_operand.hbm [shape: f32[2,16,16,128], index: 8, kind: output, shape index: {}]  }
   0x1   :  { %15 = vsyncpa [#allocation4 + $0x1], 0 }
   0x2   :  { %16 = vsyncpa [#allocation5], 0 }
   0x3   :  { %18 = vsyncpa [#allocation5 + $0x1], 0  ;;  %s3289_s27 = smov 0   ;;  %s3291_s28 = smov 0  }
   0x4   :  { %s3293_s29 = smov 0   ;;  %s3295_s30 = smov 0  }
   0x5 LB: > { %s3310_s9 = sadd.s32 4294967295, %s3233_s30   ;;  %s2520_s10 = sadd.s32 4294967294, %s3233_s30   ;;  %s3233_s30 = sphi %s3295_s30, %s4109_s30   ;;  %s3229_s29 = sphi %s3293_s29, %s4108_s29   ;;  %s3225_s28 = sphi %s3291_s28, %s4107_s28   ;;  %s3221_s27 = sphi %s3289_s27, %s4106_s27  }
   0x6   : > { %s3314_s11 = sadd.s32 1, %s3233_s30   ;;  %s31_s12 = sadd.s32 1, %s3229_s29 }
   0x7   : > { %s28_s13 = ssub.s32 %s3233_s30, %s3314_s11  ;;  %p38_p0 = scmp.ne.s32.totalorder %s3229_s29, %s3225_s28 }
   0x8   : > { %p29_p1 = scmp.eq.s32.totalorder %s28_s13, 0  ;;  %p39_p2 = scmp.eq.s32.totalorder %s3233_s30, 0 }
   0x9   : > { %p44_p3 = scmp.ne.s32.totalorder %s3225_s28, %s3221_s27  ;;  %p45_p4 = scmp.eq.s32.totalorder %s3310_s9, 0 }
   0xa   : > { %s3326_s14 = scalar_select %p29_p1, %s3229_s29, %s31_s12  }
   0xb   : > { %p3328_p5 = por %p39_p2, %p38_p0  ;;  %p3332_p6 = por %p45_p4, %p44_p3 }
   0xc   : > { %p215_p7 = scmp.eq.s32.totalorder %s3310_s9, 1  ;;  %p221_p8 = scmp.eq.s32.totalorder %s2520_s10, 1 }
   0xd   : > { %p3068_p10 = scmp.lt.s32.totalorder %s3233_s30, 2  ;;  %s262_s19 = sand.u32 1, %s3229_s29  }
   0xe   : > { %p3339_p11 = por %p215_p7, %p38_p0  ;;  %p3343_p12 = por %p221_p8, %p44_p3 }
   0xf   : > { %s2654_s20 = sshll.u32 %s3233_s30, 12  ;;  %s2523_s21 = sshll.u32 %s262_s19, 8 }
  0x10   : > { %s4100_s17 = scalar_select %p3339_p11, 1, 0 }
  0x11   : > { %s4101_s18 = scalar_select %p3343_p12, 1, 0 }
  0x12   : > { %s3352_s24 = scalar_lea.hbm %s4088_s0, %s2654_s20  ;;  %s266_s25 = scalar_lea.vmem [#allocation3], %s2523_s21 }
  0x13   : > { %s273_s26 = sshll.u32 %s266_s25, 4  ;;  %p3356_p13 = pnand %p3068_p10, %p3328_p5  ;;  %s3360_s26 = int_to_ptr.vmem [resolvable:$true] %s273_s26 }
  0x14   : > { %s3362_s12 = scalar_lea.sflag [#allocation4], %s262_s19  ;;  %s3137_s13 = scalar_lea.hbm %s3352_s24, 4096 }
  0x15   : > { %p3138_p0 = scmp.ne.s32.totalorder %s3352_s24, %s3137_s13  ;;  %p3139_p1 = pneg %p3356_p13 }
  0x16   : > { %s3142_s21 = scalar_lea.hbm %s4088_s0, 8192  ;;  %p3143_p4 = scmp.lt.u32.totalorder %s3352_s24, %s4088_s0 }
  0x17   : > { %p3140_p2 = pnand %p3139_p1, %p3138_p0  ;;  %p3144_p5 = scmp.lt.u32.totalorder %s3142_s21, %s3137_s13 }
  0x18   : > { %p3146_p8 = scmp.lt.u32.totalorder %s3137_s13, %s3352_s24 }
  0x19   : > { %p3141_p3 = pneg %p3140_p2  ;;  %p3145_p7 = por %p3144_p5, %p3143_p4 }
  0x1b   : > { %p3147_p10 = por %p3146_p8, %p3145_p7 }
  0x1d   : > { %p3148_p9 = pnand %p3147_p10, %p3141_p3 }
  0x1f   : > { %3151 = shalt.err (!%p3148_p9)
}
  0x20   : > { %s3152_s19 = scalar_lea.vmem %s3360_s26, 4096  ;;  %s3235_s25 = smov [#allocation3]  }
  0x21   : > { %p3153_p0 = scmp.ne.s32.totalorder %s3360_s26, %s3152_s19  ;;  %s3157_s20 = sshll.u32 %s3235_s25, 4  ;;  %s3158_s20 = int_to_ptr.vmem [resolvable:$false] %s3157_s20 }
  0x22   : > { %s3159_s15 = scalar_lea.vmem %s3158_s20, 8192  ;;  %p3160_p11 = scmp.lt.s32.totalorder %s3360_s26, %s3158_s20 }
  0x23   : > { %p3155_p2 = pnand %p3153_p0, %p3139_p1  ;;  %p3161_p4 = scmp.lt.s32.totalorder %s3159_s15, %s3152_s19 }
  0x25   : > { %p3156_p12 = pneg %p3155_p2  ;;  %p3162_p5 = por %p3161_p4, %p3160_p11 }
  0x27   : > { %p3163_p7 = pnand %p3162_p5, %p3156_p12 }
  0x29   : > { %3166 = shalt.err (!%p3163_p7)
}
  0x2a   : > { %s3236_s13 = smov 128   ;;  %s3237_s21 = smov 8  }
  0x2b   : > { %3063 = dma.hbm_to_vmem [thread:$0]  (!%p3356_p13), %s3352_s24, 4096, %s3360_s26, %s3362_s12, %s3236_s13, %s3236_s13, %s3237_s21  }
  0x2c   : > { %p2526_p9 = scmp.ge.s32.totalorder %s3233_s30, 1  ;;  %p281_p1 = scmp.lt.s32.totalorder %s3233_s30, 3 }
  0x2e   : > { %p282_p3 = pnand %p2526_p9, %p281_p1 }
  0x2f   : > { %s3393_s22 = sand.u32 (!%p282_p3), 1, %s3225_s28  }
  0x30   : > { %285 = sbr.rel (%p282_p3) target bundleno = 1084 (0x43c), region = 52  ;;  %s2527_s23 = sshll.u32 (!%p282_p3), %s3393_s22, 8 }
  0x31   : > { %s288_s19 = scalar_lea.sflag (!%p282_p3), [#allocation4], %s3393_s22  ;;  %s3399_s25 = scalar_lea.vmem (!%p282_p3), [#allocation3], %s2527_s23 }
  0x37   : > { %3212 = dma.done.wait (%p3332_p6), %s288_s19, 4096  }
  0x38   : > { %3214 = vsyncadd (%p3332_p6), %s288_s19, 4294963200  ;;  %v3109_v0 = vld [vmem:[%s4089_s1] sm:$0xff]   ;;  %v3110_v1 = vld [vmem:[%s4089_s1 + $0x8] sm:$0xff]   ;;  %vm747_vm0 = vcmask 261120   ;;  %vm750_vm1 = vcmask 254976   ;;  %vm788_vm2 = vcmask 1040384  }
  0x39   : > { %2764 = vmatprep.subr.bf16.mxu0 %v3109_v0  ;;  %v3111_v2 = vld [vmem:[%s4089_s1 + $0x10] sm:$0xff]   ;;  %v3112_v3 = vld [vmem:[%s4089_s1 + $0x18] sm:$0xff]   ;;  %v3422_v6 = vld [vmem:[%s4092_s4] ss:$0 sm:$0xff]  ;;  %s3239_s16 = smov 64   ;;  %s3240_s13 = smov 32  }
  0x3a   : > { %2765 = vmatpush3.bf16.msra.mxu0 %v3109_v0  ;;  %v325_v4 = vld [vmem:[%s3399_s25] sm:$0xff]  ;;  %v326_v5 = vld [vmem:[%s3399_s25 + $0x8] sm:$0xff]  ;;  %v3429_v9 = vld [vmem:[%s4093_s5] ss:$0 sm:$0xff]  ;;  %vm1272_vm3 = vcmask 523264   ;;  %vm1377_vm4 = vcmask 785408  }
  0x3b   : > { %2766 = vmatprep.subr.bf16.mxu0 %v3110_v1  ;;  %v364_v7 = vmul.f32 %v3422_v6, %v325_v4  ;;  %v365_v8 = vmul.f32 %v3422_v6, %v326_v5  ;;  %v3113_v12 = vld [vmem:[%s4089_s1 + $0x20] sm:$0xff]   ;;  %v328_v16 = vld [vmem:[%s3399_s25 + $0x18] sm:$0xff]  ;;  %v329_v17 = vld [vmem:[%s3399_s25 + $0x20] sm:$0xff]  ;;  %p4103_p11 = scmp.ne.s32.totalorder %s4100_s17, 0  ;;  %s3241_s26 = smov [#allocation6]  }
  0x3c   : > { %v327_v15 = vld [vmem:[%s3399_s25 + $0x10] sm:$0xff]  ;;  %v3114_v19 = vld [vmem:[%s4089_s1 + $0x28] sm:$0xff]   ;;  %v330_v21 = vld [vmem:[%s3399_s25 + $0x28] sm:$0xff]  ;;  %v367_v22 = vmul.f32 %v3422_v6, %v328_v16  ;;  %v368_v23 = vmul.f32 %v3422_v6, %v329_v17  ;;  %s3171_s10 = sshll.u32 %s3241_s26, 4  ;;  %s3172_s10 = int_to_ptr.vmem [resolvable:$false] %s3171_s10 }
  0x3d   : > { %v403_v10 = vadd.f32 %v3429_v9, %v364_v7  ;;  %v404_v11 = vadd.f32 %v3429_v9, %v365_v8  ;;  %v366_v20 = vmul.f32 %v3422_v6, %v327_v15  ;;  %v331_v24 = vld [vmem:[%s3399_s25 + $0x30] sm:$0xff]  ;;  %v369_v25 = vmul.f32 %v3422_v6, %v330_v21  ;;  %v332_v26 = vld [vmem:[%s3399_s25 + $0x38] sm:$0xff]  ;;  %v3115_v27 = vld [vmem:[%s4089_s1 + $0x30] sm:$0xff]   ;;  %s3173_s12 = scalar_lea.vmem %s3172_s10, 8192 }
  0x3e   : > { %2767 = vmatpush3.bf16.msra.mxu0 %v3110_v1  ;;  %v406_v29 = vadd.f32 %v3429_v9, %v367_v22  ;;  %v407_v30 = vadd.f32 %v3429_v9, %v368_v23  ;;  %v370_v31 = vmul.f32 %v3422_v6, %v331_v24  ;;  %v333_v32 = vld [vmem:[%s3399_s25 + $0x40] sm:$0xff]  ;;  %v371_v33 = vmul.f32 %v3422_v6, %v332_v26  ;;  %v334_v35 = vld [vmem:[%s3399_s25 + $0x48] sm:$0xff]  ;;  %v335_v44 = vld [vmem:[%s3399_s25 + $0x50] sm:$0xff] }
  0x3f   : > { %2768 = vmatprep.subr.bf16.mxu0 %v3111_v2  ;;  %v435_v13 = vmax.f32 %v403_v10, 0.0  ;;  %v436_v14 = vmax.f32 %v404_v11, 0.0  ;;  %v405_v28 = vadd.f32 %v3429_v9, %v366_v20  ;;  %v408_v34 = vadd.f32 %v3429_v9, %v369_v25  ;;  %v3116_v36 = vld [vmem:[%s4089_s1 + $0x38] sm:$0xff]   ;;  %v351_v45 = vld [vmem:[%s3399_s25 + $0xd0] sm:$0xff]  ;;  %v336_v47 = vld [vmem:[%s3399_s25 + $0x58] sm:$0xff] }
  0x40   : > { %v372_v38 = vmul.f32 %v3422_v6, %v333_v32  ;;  %v438_v39 = vmax.f32 %v406_v29, 0.0  ;;  %v439_v40 = vmax.f32 %v407_v30, 0.0  ;;  %v409_v41 = vadd.f32 %v3429_v9, %v370_v31  ;;  %v352_v48 = vld [vmem:[%s3399_s25 + $0xd8] sm:$0xff]  ;;  %v337_v50 = vld [vmem:[%s3399_s25 + $0x60] sm:$0xff]  ;;  %v354_v53 = vld [vmem:[%s3399_s25 + $0xe8] sm:$0xff] }
  0x41   : > { %v467_v18 = vpack.c.bf16 %v436_v14, %v435_v13  ;;  %v437_v37 = vmax.f32 %v405_v28, 0.0  ;;  %v410_v42 = vadd.f32 %v3429_v9, %v371_v33  ;;  %v373_v43 = vmul.f32 %v3422_v6, %v334_v35  ;;  %v353_v51 = vld [vmem:[%s3399_s25 + $0xe0] sm:$0xff]  ;;  %v355_v57 = vld [vmem:[%s3399_s25 + $0xf0] sm:$0xff]  ;;  %v356_v62 = vld [vmem:[%s3399_s25 + $0xf8] sm:$0xff] }
  0x42   : > { %2769 = vmatpush3.bf16.msra.mxu0 %v3111_v2  ;;  %v440_v46 = vmax.f32 %v408_v34, 0.0  ;;  %v411_v49 = vadd.f32 %v3429_v9, %v372_v38  ;;  %v441_v52 = vmax.f32 %v409_v41, 0.0  ;;  %v374_v59 = vmul.f32 %v3422_v6, %v335_v44  ;;  %v338_v1 = vld [vmem:[%s3399_s25 + $0x68] sm:$0xff]  ;;  %v339_v31 = vld [vmem:[%s3399_s25 + $0x70] sm:$0xff]  ;;  %v340_v32 = vld [vmem:[%s3399_s25 + $0x78] sm:$0xff] }
  0x43   : > { %2770 = vmatprep.subr.bf16.mxu0 %v3112_v3  ;;  %2780 = vmatprep.mubr.bf16.mxu0 %v467_v18  ;;  %v468_v54 = vpack.c.bf16 %v438_v39, %v437_v37  ;;  %v442_v55 = vmax.f32 %v410_v42, 0.0  ;;  %v412_v56 = vadd.f32 %v3429_v9, %v373_v43  ;;  %v390_v60 = vmul.f32 %v3422_v6, %v351_v45  ;;  %v341_v33 = vld [vmem:[%s3399_s25 + $0x80] sm:$0xff]  ;;  %v342_v34 = vld [vmem:[%s3399_s25 + $0x88] sm:$0xff] }
  0x44   : > { %v469_v58 = vpack.c.bf16 %v440_v46, %v439_v40  ;;  %v391_v61 = vmul.f32 %v3422_v6, %v352_v48  ;;  %v443_v63 = vmax.f32 %v411_v49, 0.0  ;;  %v375_v0 = vmul.f32 %v3422_v6, %v336_v47 }
  0x45   : > { %v392_v2 = vmul.f32 %v3422_v6, %v353_v51  ;;  %v376_v4 = vmul.f32 %v3422_v6, %v337_v50  ;;  %v429_v5 = vadd.f32 %v3429_v9, %v390_v60  ;;  %v394_v8 = vmul.f32 %v3422_v6, %v355_v57  ;;  %v343_v50 = vld [vmem:[%s3399_s25 + $0x90] sm:$0xff]  ;;  %v344_v51 = vld [vmem:[%s3399_s25 + $0x98] sm:$0xff] }
  0x46   : > { %2771 = vmatpush3.bf16.msra.mxu0 %v3112_v3  ;;  %v393_v3 = vmul.f32 %v3422_v6, %v354_v53  ;;  %v430_v7 = vadd.f32 %v3429_v9, %v391_v61  ;;  %v444_v10 = vmax.f32 %v412_v56, 0.0  ;;  %v395_v13 = vmul.f32 %v3422_v6, %v356_v62  ;;  %v346_v53 = vld [vmem:[%s3399_s25 + $0xa8] sm:$0xff] }
  0x47   : > { %2772 = vmatprep.subr.bf16.mxu0 %v3113_v12  ;;  %v431_v11 = vadd.f32 %v3429_v9, %v392_v2  ;;  %v377_v14 = vmul.f32 %v3422_v6, %v338_v1  ;;  %v461_v15 = vmax.f32 %v429_v5, 0.0  ;;  %v433_v17 = vadd.f32 %v3429_v9, %v394_v8  ;;  %v348_v5 = vld [vmem:[%s3399_s25 + $0xb8] sm:$0xff]  ;;  %v350_v8 = vld [vmem:[%s3399_s25 + $0xc8] sm:$0xff] }
  0x48   : > { %v462_v16 = vmax.f32 %v430_v7, 0.0  ;;  %v434_v20 = vadd.f32 %v3429_v9, %v395_v13  ;;  %v470_v21 = vpack.c.bf16 %v442_v55, %v441_v52  ;;  %v413_v24 = vadd.f32 %v3429_v9, %v374_v59  ;;  %v345_v52 = vld [vmem:[%s3399_s25 + $0xa0] sm:$0xff] }
  0x49   : > { %v463_v18 = vmax.f32 %v431_v11, 0.0  ;;  %v465_v23 = vmax.f32 %v433_v17, 0.0  ;;  %v414_v25 = vadd.f32 %v3429_v9, %v375_v0  ;;  %v471_v28 = vpack.c.bf16 %v444_v10, %v443_v63  ;;  %v349_v7 = vld [vmem:[%s3399_s25 + $0xc0] sm:$0xff] }
  0x4a   : > { %2773 = vmatpush3.bf16.msra.mxu0 %v3113_v12  ;;  %v432_v12 = vadd.f32 %v3429_v9, %v393_v3  ;;  %v3495_v22 = vpack.c.bf16 %v462_v16, %v461_v15  ;;  %v415_v29 = vadd.f32 %v3429_v9, %v376_v4  ;;  %v416_v30 = vadd.f32 %v3429_v9, %v377_v14  ;;  %v347_v4 = vld [vmem:[%s3399_s25 + $0xb0] sm:$0xff] }
  0x4b   : > { %2774 = vmatprep.subr.bf16.mxu0 %v3114_v19  ;;  %v446_v37 = vmax.f32 %v414_v25, 0.0  ;;  %v378_v38 = vmul.f32 %v3422_v6, %v339_v31  ;;  %v379_v39 = vmul.f32 %v3422_v6, %v340_v32  ;;  %v380_v42 = vmul.f32 %v3422_v6, %v341_v33  ;;  %v3120_v32 = vld [vmem:[%s4090_s2 + $0x48] sm:$0xff]   ;;  %v3121_v33 = vld [vmem:[%s4090_s2 + $0x50] sm:$0xff]  }
  0x4c   : > { %v447_v40 = vmax.f32 %v415_v29, 0.0  ;;  %v448_v41 = vmax.f32 %v416_v30, 0.0  ;;  %v381_v43 = vmul.f32 %v3422_v6, %v342_v34  ;;  %v382_v56 = vmul.f32 %v3422_v6, %v343_v50  ;;  %v3568_v34 = vld [vmem:[%s4094_s6] ss:$0 sm:$0xff] }
  0x4d   : > { %v417_v45 = vadd.f32 %v3429_v9, %v378_v38  ;;  %v418_v46 = vadd.f32 %v3429_v9, %v379_v39  ;;  %v419_v48 = vadd.f32 %v3429_v9, %v380_v42  ;;  %v383_v57 = vmul.f32 %v3422_v6, %v344_v51 }
  0x4e   : > { %2775 = vmatpush3.bf16.msra.mxu0 %v3114_v19  ;;  %v464_v19 = vmax.f32 %v432_v12, 0.0  ;;  %v473_v47 = vpack.c.bf16 %v448_v41, %v447_v40  ;;  %v420_v49 = vadd.f32 %v3429_v9, %v381_v43  ;;  %v384_v60 = vmul.f32 %v3422_v6, %v345_v52 }
  0x4f   : > { %2776 = vmatprep.subr.bf16.mxu0 %v3115_v27  ;;  %v450_v55 = vmax.f32 %v418_v46, 0.0  ;;  %v385_v61 = vmul.f32 %v3422_v6, %v346_v53  ;;  %v421_v63 = vadd.f32 %v3429_v9, %v382_v56  ;;  %v422_v0 = vadd.f32 %v3429_v9, %v383_v57 }
  0x50   : > { %v3499_v26 = vpack.c.bf16 %v464_v19, %v463_v18  ;;  %v452_v59 = vmax.f32 %v420_v49, 0.0  ;;  %v423_v2 = vadd.f32 %v3429_v9, %v384_v60  ;;  %v386_v12 = vmul.f32 %v3422_v6, %v347_v4 }
  0x51   : > { %v424_v3 = vadd.f32 %v3429_v9, %v385_v61  ;;  %v453_v10 = vmax.f32 %v421_v63, 0.0  ;;  %v454_v11 = vmax.f32 %v422_v0, 0.0  ;;  %v387_v13 = vmul.f32 %v3422_v6, %v348_v5 }
  0x52   : > { %2777 = vmatpush3.bf16.msra.mxu0 %v3115_v27  ;;  %v466_v27 = vmax.f32 %v434_v20, 0.0  ;;  %v455_v14 = vmax.f32 %v423_v2, 0.0  ;;  %v388_v16 = vmul.f32 %v3422_v6, %v349_v7  ;;  %v389_v17 = vmul.f32 %v3422_v6, %v350_v8 }
  0x53   : > { %2778 = vmatprep.subr.bf16.mxu0 %v3116_v36  ;;  %v456_v15 = vmax.f32 %v424_v3, 0.0  ;;  %v476_v18 = vpack.c.bf16 %v454_v11, %v453_v10  ;;  %v425_v19 = vadd.f32 %v3429_v9, %v386_v12  ;;  %v426_v20 = vadd.f32 %v3429_v9, %v387_v13 }
  0x54   : > { %v3507_v35 = vpack.c.bf16 %v466_v27, %v465_v23  ;;  %v427_v23 = vadd.f32 %v3429_v9, %v388_v16  ;;  %v3238_v6 = vmov 0.0  }
  0x55   : > { %v457_v25 = vmax.f32 %v425_v19, 0.0  ;;  %v458_v27 = vmax.f32 %v426_v20, 0.0  ;;  %748 = vst.msk [vmem:[#allocation2] sm:$0xff] %vm747_vm0, %v3238_v6  ;;  %749 = vst.msk [vmem:[#allocation2 + $0x8] sm:$0xff] %vm747_vm0, %v3238_v6 }
  0x56   : > { %2779 = vmatpush3.bf16.msra.mxu0 %v3116_v36  ;;  %v445_v36 = vmax.f32 %v413_v24, 0.0  ;;  %v428_v24 = vadd.f32 %v3429_v9, %v389_v17  ;;  %751 = vst.msk [vmem:[#allocation2 + $0x10] sm:$0x3] %vm750_vm1, %v3238_v6  ;;  %755 = vst.msk [vmem:[#allocation2 + $0x1a8] sm:$0x3] %vm750_vm1, %v3238_v6  ;;  %v3117_v9 = vld [vmem:[%s4090_s2 + $0x30] sm:$0xff]  }
  0x57   : > { %v478_v30 = vpack.c.bf16 %v458_v27, %v457_v25  ;;  %753 = vst.msk [vmem:[#allocation2 + $0x198] sm:$0xff] %vm747_vm0, %v3238_v6  ;;  %754 = vst.msk [vmem:[#allocation2 + $0x1a0] sm:$0xff] %vm747_vm0, %v3238_v6  ;;  %2980 = vmatprep.subr.bf16.mxu1 %v3117_v9  ;;  %2812 = vmatprep.subr.bf16.mxu0 %v3117_v9 }
  0x58   : > { %v472_v44 = vpack.c.bf16 %v446_v37, %v445_v36  ;;  %v460_v29 = vmax.f32 %v428_v24, 0.0  ;;  %2986 = vmatpush3.bf16.msra.mxu1 %v3117_v9 }
  0x59   : > { %2781 = vmatmul.mubr.bf16.vlgmr.msra.gmra.mrb[0].mxu0 %v468_v54  ;;  %v449_v54 = vmax.f32 %v417_v45, 0.0 }
  0x5a   : > { %2784 = vmatprep.mubr.bf16.mxu0 %v469_v58  ;;  %v451_v58 = vmax.f32 %v419_v48, 0.0  ;;  %2813 = vmatpush3.bf16.msra.mxu0 %v3117_v9 }
  0x5b   : > { %v474_v62 = vpack.c.bf16 %v450_v55, %v449_v54 }
  0x5c   : > { %v475_v1 = vpack.c.bf16 %v452_v59, %v451_v58 }
  0x61   : > { %2785 = vmatmul.mubr.bf16.gmra.mrb[4].mxu0 %v470_v21  ;;  %v477_v21 = vpack.c.bf16 %v456_v15, %v455_v14 }
  0x62   : > { %2788 = vmatprep.mubr.bf16.mxu0 %v471_v28  ;;  %v459_v28 = vmax.f32 %v427_v23, 0.0 }
  0x64   : > { %v479_v31 = vpack.c.bf16 %v460_v29, %v459_v28 }
  0x69   : > { %2789 = vmatmul.mubr.bf16.gmra.mrb[8].mxu0 %v472_v44 }
  0x6a   : > { %2792 = vmatprep.mubr.bf16.mxu0 %v473_v47 }
  0x71   : > { %2793 = vmatmul.mubr.bf16.gmra.mrb[12].mxu0 %v474_v62 }
  0x72   : > { %2796 = vmatprep.mubr.bf16.mxu0 %v475_v1 }
  0x79   : > { %2797 = vmatmul.mubr.bf16.gmra.mrb[16].mxu0 %v476_v18 }
  0x7a   : > { %2800 = vmatprep.mubr.bf16.mxu0 %v477_v21 }
  0x81   : > { %2801 = vmatmul.mubr.bf16.gmra.mrb[20].mxu0 %v478_v30 }
  0x82   : > { %2804 = vmatprep.mubr.bf16.mxu0 %v479_v31 }
  0x89   : > { %2805 = vmatmul.mubr.bf16.gmra.mrb[24].mxu0 %v3495_v22  ;;  %v3118_v22 = vld [vmem:[%s4090_s2 + $0x38] sm:$0xff]  }
  0x8a   : > { %2808 = vmatprep.mubr.bf16.mxu0 %v3499_v26  ;;  %2981 = vmatprep.subr.bf16.mxu1 %v3118_v22  ;;  %v3119_v26 = vld [vmem:[%s4090_s2 + $0x40] sm:$0xff]  }
  0x8b   : > { %2814 = vmatprep.subr.bf16.mxu0 %v3118_v22  ;;  %2987 = vmatpush3.bf16.msra.mxu1 %v3118_v22 }
  0x8c   : > { %2815 = vmatpush3.bf16.msra.mxu0 %v3118_v22  ;;  %2982 = vmatprep.subr.bf16.mxu1 %v3119_v26 }
  0x8d   : > { %2816 = vmatprep.subr.bf16.mxu0 %v3119_v26 }
  0x8f   : > { %2988 = vmatpush3.bf16.msra.mxu1 %v3119_v26 }
  0x90   : > { %2817 = vmatpush3.bf16.msra.mxu0 %v3119_v26  ;;  %2983 = vmatprep.subr.bf16.mxu1 %v3120_v32 }
  0x91   : > { %2809 = vmatmul.mubr.bf16.gmra.mrb[28].mxu0 %v3507_v35  ;;  %2818 = vmatprep.subr.bf16.mxu0 %v3120_v32 }
  0x93   : > { %2989 = vmatpush3.bf16.msra.mxu1 %v3120_v32 }
  0x94   : > { %2819 = vmatpush3.bf16.msra.mxu0 %v3120_v32  ;;  %2984 = vmatprep.subr.bf16.mxu1 %v3121_v33 }
  0x95   : > { %2820 = vmatprep.subr.bf16.mxu0 %v3121_v33 }
  0x97   : > { %2990 = vmatpush3.bf16.msra.mxu1 %v3121_v33 }
  0x98   : > { %2821 = vmatpush3.bf16.msra.mxu0 %v3121_v33 }
 0x12c   : > { %v2782_v35 = vpop.f32.mrb[0].mxu0 }
 0x12d   : > { %v597_v36 = vadd.f32 %v2782_v35, %v3568_v34  ;;  %v588_v37 = vpop.f32.mrb[1].mxu0 }
 0x12e   : > { %v589_v38 = vadd.f32 %v3568_v34, %v588_v37  ;;  %v2783_v39 = vpop.f32.mrb[2].mxu0 }
 0x12f   : > { %v717_v40 = vmax.f32 %v597_v36, 0.0  ;;  %v600_v41 = vadd.f32 %v2783_v39, %v3568_v34  ;;  %v591_v42 = vpop.f32.mrb[3].mxu0 }
 0x130   : > { %v715_v43 = vmax.f32 %v589_v38, 0.0  ;;  %v592_v44 = vadd.f32 %v3568_v34, %v591_v42 }
 0x131   : > { %v792_v45 = vrot.slane %v717_v40, 7  ;;  %v718_v46 = vmax.f32 %v600_v41, 0.0 }
 0x132   : > { %v789_v47 = vrot.slane %v715_v43, 7  ;;  %v716_v48 = vmax.f32 %v592_v44, 0.0 }
 0x133   : > { %v886_v49 = vsel %vm788_vm2, 0.0, %v792_v45  ;;  %v793_v50 = vrot.slane %v718_v46, 7 }
 0x134   : > { %921 = vst.msk [vmem:[#allocation2 + $0x30] sm:$0xff] %vm747_vm0, %v886_v49  ;;  %v885_v51 = vsel %vm788_vm2, 0.0, %v789_v47  ;;  %v790_v52 = vrot.slane %v716_v48, 7  ;;  %v2786_v53 = vpop.f32.mrb[4].mxu0 }
 0x135   : > { %918 = vst.msk [vmem:[#allocation2 + $0x18] sm:$0xff] %vm747_vm0, %v885_v51  ;;  %v794_v54 = vsel %vm788_vm2, %v792_v45, %v793_v50  ;;  %v902_v55 = vsel %vm788_vm2, %v793_v50, 0.0  ;;  %v613_v56 = vadd.f32 %v2786_v53, %v3568_v34  ;;  %v604_v57 = vpop.f32.mrb[5].mxu0 }
 0x136   : > { %922 = vst.msk [vmem:[#allocation2 + $0x38] sm:$0xff] %vm747_vm0, %v794_v54  ;;  %v791_v58 = vsel %vm788_vm2, %v789_v47, %v790_v52  ;;  %v901_v59 = vsel %vm788_vm2, %v790_v52, 0.0  ;;  %v605_v60 = vadd.f32 %v3568_v34, %v604_v57  ;;  %v2787_v61 = vpop.f32.mrb[6].mxu0 }
 0x137   : > { %923 = vst.msk [vmem:[#allocation2 + $0x40] sm:$0x3] %vm750_vm1, %v902_v55  ;;  %920 = vst.msk [vmem:[#allocation2 + $0x28] sm:$0x3] %vm750_vm1, %v901_v59  ;;  %v721_v62 = vmax.f32 %v613_v56, 0.0  ;;  %v616_v63 = vadd.f32 %v2787_v61, %v3568_v34  ;;  %v607_v0 = vpop.f32.mrb[7].mxu0 }
 0x138   : > { %919 = vst.msk [vmem:[#allocation2 + $0x20] sm:$0xff] %vm747_vm0, %v791_v58  ;;  %v719_v1 = vmax.f32 %v605_v60, 0.0  ;;  %v608_v2 = vadd.f32 %v3568_v34, %v607_v0 }
 0x139   : > { %v798_v3 = vrot.slane %v721_v62, 7  ;;  %v722_v4 = vmax.f32 %v616_v63, 0.0 }
 0x13a   : > { %v795_v5 = vrot.slane %v719_v1, 7  ;;  %v720_v7 = vmax.f32 %v608_v2, 0.0 }
 0x13b   : > { %v888_v8 = vsel %vm788_vm2, 0.0, %v798_v3  ;;  %v799_v10 = vrot.slane %v722_v4, 7  ;;  %v3122_v4 = vld [vmem:[%s4090_s2 + $0x58] sm:$0xff]  }
 0x13c   : > { %927 = vst.msk [vmem:[#allocation2 + $0x60] sm:$0xff] %vm747_vm0, %v888_v8  ;;  %v887_v11 = vsel %vm788_vm2, 0.0, %v795_v5  ;;  %v796_v12 = vrot.slane %v720_v7, 7  ;;  %v2790_v13 = vpop.f32.mrb[8].mxu0  ;;  %2985 = vmatprep.subr.bf16.mxu1 %v3122_v4  ;;  %2822 = vmatprep.subr.bf16.mxu0 %v3122_v4 }
 0x13d   : > { %924 = vst.msk [vmem:[#allocation2 + $0x48] sm:$0xff] %vm747_vm0, %v887_v11  ;;  %v800_v14 = vsel %vm788_vm2, %v798_v3, %v799_v10  ;;  %v904_v15 = vsel %vm788_vm2, %v799_v10, 0.0  ;;  %v629_v16 = vadd.f32 %v2790_v13, %v3568_v34  ;;  %v620_v17 = vpop.f32.mrb[9].mxu0  ;;  %v3644_v11 = vld [vmem:[%s4090_s2] sm:$0xff]   ;;  %2991 = vmatpush3.bf16.msra.mxu1 %v3122_v4  ;;  %2823 = vmatpush3.bf16.msra.mxu0 %v3122_v4 }
 0x13e   : > { %928 = vst.msk [vmem:[#allocation2 + $0x68] sm:$0xff] %vm747_vm0, %v800_v14  ;;  %v797_v18 = vsel %vm788_vm2, %v795_v5, %v796_v12  ;;  %v903_v19 = vsel %vm788_vm2, %v796_v12, 0.0  ;;  %v621_v20 = vadd.f32 %v3568_v34, %v620_v17  ;;  %v2791_v21 = vpop.f32.mrb[10].mxu0  ;;  %2856 = vmatprep.subr.bf16.mxu1 %v3644_v11 }
 0x13f   : > { %929 = vst.msk [vmem:[#allocation2 + $0x70] sm:$0x3] %vm750_vm1, %v904_v15  ;;  %926 = vst.msk [vmem:[#allocation2 + $0x58] sm:$0x3] %vm750_vm1, %v903_v19  ;;  %v725_v23 = vmax.f32 %v629_v16, 0.0  ;;  %v632_v24 = vadd.f32 %v2791_v21, %v3568_v34  ;;  %v623_v25 = vpop.f32.mrb[11].mxu0 }
 0x140   : > { %925 = vst.msk [vmem:[#allocation2 + $0x50] sm:$0xff] %vm747_vm0, %v797_v18  ;;  %v723_v27 = vmax.f32 %v621_v20, 0.0  ;;  %v624_v28 = vadd.f32 %v3568_v34, %v623_v25 }
 0x141   : > { %v804_v29 = vrot.slane %v725_v23, 7  ;;  %v726_v30 = vmax.f32 %v632_v24, 0.0 }
 0x142   : > { %v801_v31 = vrot.slane %v723_v27, 7  ;;  %v724_v6 = vmax.f32 %v624_v28, 0.0 }
 0x143   : > { %v890_v9 = vsel %vm788_vm2, 0.0, %v804_v29  ;;  %v805_v22 = vrot.slane %v726_v30, 7 }
 0x144   : > { %933 = vst.msk [vmem:[#allocation2 + $0x90] sm:$0xff] %vm747_vm0, %v890_v9  ;;  %v889_v26 = vsel %vm788_vm2, 0.0, %v801_v31  ;;  %v802_v32 = vrot.slane %v724_v6, 7  ;;  %v2794_v33 = vpop.f32.mrb[12].mxu0 }
 0x145   : > { %930 = vst.msk [vmem:[#allocation2 + $0x78] sm:$0xff] %vm747_vm0, %v889_v26  ;;  %v806_v35 = vsel %vm788_vm2, %v804_v29, %v805_v22  ;;  %v906_v36 = vsel %vm788_vm2, %v805_v22, 0.0  ;;  %v645_v37 = vadd.f32 %v2794_v33, %v3568_v34  ;;  %v636_v38 = vpop.f32.mrb[13].mxu0 }
 0x146   : > { %934 = vst.msk [vmem:[#allocation2 + $0x98] sm:$0xff] %vm747_vm0, %v806_v35  ;;  %v803_v39 = vsel %vm788_vm2, %v801_v31, %v802_v32  ;;  %v905_v40 = vsel %vm788_vm2, %v802_v32, 0.0  ;;  %v637_v41 = vadd.f32 %v3568_v34, %v636_v38  ;;  %v2795_v42 = vpop.f32.mrb[14].mxu0 }
 0x147   : > { %935 = vst.msk [vmem:[#allocation2 + $0xa0] sm:$0x3] %vm750_vm1, %v906_v36  ;;  %932 = vst.msk [vmem:[#allocation2 + $0x88] sm:$0x3] %vm750_vm1, %v905_v40  ;;  %v729_v43 = vmax.f32 %v645_v37, 0.0  ;;  %v648_v44 = vadd.f32 %v2795_v42, %v3568_v34  ;;  %v639_v45 = vpop.f32.mrb[15].mxu0 }
 0x148   : > { %931 = vst.msk [vmem:[#allocation2 + $0x80] sm:$0xff] %vm747_vm0, %v803_v39  ;;  %v727_v46 = vmax.f32 %v637_v41, 0.0  ;;  %v640_v47 = vadd.f32 %v3568_v34, %v639_v45 }
 0x149   : > { %v810_v48 = vrot.slane %v729_v43, 7  ;;  %v730_v49 = vmax.f32 %v648_v44, 0.0 }
 0x14a   : > { %v807_v50 = vrot.slane %v727_v46, 7  ;;  %v728_v51 = vmax.f32 %v640_v47, 0.0 }
 0x14b   : > { %v892_v52 = vsel %vm788_vm2, 0.0, %v810_v48  ;;  %v811_v53 = vrot.slane %v730_v49, 7 }
 0x14c   : > { %939 = vst.msk [vmem:[#allocation2 + $0xc0] sm:$0xff] %vm747_vm0, %v892_v52  ;;  %v891_v54 = vsel %vm788_vm2, 0.0, %v807_v50  ;;  %v808_v55 = vrot.slane %v728_v51, 7  ;;  %v2798_v56 = vpop.f32.mrb[16].mxu0 }
 0x14d   : > { %936 = vst.msk [vmem:[#allocation2 + $0xa8] sm:$0xff] %vm747_vm0, %v891_v54  ;;  %v812_v57 = vsel %vm788_vm2, %v810_v48, %v811_v53  ;;  %v908_v58 = vsel %vm788_vm2, %v811_v53, 0.0  ;;  %v661_v59 = vadd.f32 %v2798_v56, %v3568_v34  ;;  %v652_v60 = vpop.f32.mrb[17].mxu0 }
 0x14e   : > { %940 = vst.msk [vmem:[#allocation2 + $0xc8] sm:$0xff] %vm747_vm0, %v812_v57  ;;  %v809_v61 = vsel %vm788_vm2, %v807_v50, %v808_v55  ;;  %v907_v62 = vsel %vm788_vm2, %v808_v55, 0.0  ;;  %v653_v63 = vadd.f32 %v3568_v34, %v652_v60  ;;  %v2799_v0 = vpop.f32.mrb[18].mxu0 }
 0x14f   : > { %941 = vst.msk [vmem:[#allocation2 + $0xd0] sm:$0x3] %vm750_vm1, %v908_v58  ;;  %938 = vst.msk [vmem:[#allocation2 + $0xb8] sm:$0x3] %vm750_vm1, %v907_v62  ;;  %v733_v1 = vmax.f32 %v661_v59, 0.0  ;;  %v664_v2 = vadd.f32 %v2799_v0, %v3568_v34  ;;  %v655_v3 = vpop.f32.mrb[19].mxu0 }
 0x150   : > { %937 = vst.msk [vmem:[#allocation2 + $0xb0] sm:$0xff] %vm747_vm0, %v809_v61  ;;  %v731_v5 = vmax.f32 %v653_v63, 0.0  ;;  %v656_v7 = vadd.f32 %v3568_v34, %v655_v3 }
 0x151   : > { %v816_v8 = vrot.slane %v733_v1, 7  ;;  %v734_v10 = vmax.f32 %v664_v2, 0.0 }
 0x152   : > { %v813_v12 = vrot.slane %v731_v5, 7  ;;  %v732_v13 = vmax.f32 %v656_v7, 0.0 }
 0x153   : > { %v894_v14 = vsel %vm788_vm2, 0.0, %v816_v8  ;;  %v817_v15 = vrot.slane %v734_v10, 7 }
 0x154   : > { %945 = vst.msk [vmem:[#allocation2 + $0xf0] sm:$0xff] %vm747_vm0, %v894_v14  ;;  %v893_v16 = vsel %vm788_vm2, 0.0, %v813_v12  ;;  %v814_v17 = vrot.slane %v732_v13, 7  ;;  %v2802_v18 = vpop.f32.mrb[20].mxu0 }
 0x155   : > { %942 = vst.msk [vmem:[#allocation2 + $0xd8] sm:$0xff] %vm747_vm0, %v893_v16  ;;  %v818_v19 = vsel %vm788_vm2, %v816_v8, %v817_v15  ;;  %v910_v20 = vsel %vm788_vm2, %v817_v15, 0.0  ;;  %v677_v21 = vadd.f32 %v2802_v18, %v3568_v34  ;;  %v668_v23 = vpop.f32.mrb[21].mxu0  ;;  %v1090_v37 = vld [vmem:[#allocation2 + $0xc2] sm:$0xff] }
 0x156   : > { %946 = vst.msk [vmem:[#allocation2 + $0xf8] sm:$0xff] %vm747_vm0, %v818_v19  ;;  %v815_v24 = vsel %vm788_vm2, %v813_v12, %v814_v17  ;;  %v909_v25 = vsel %vm788_vm2, %v814_v17, 0.0  ;;  %v669_v27 = vadd.f32 %v3568_v34, %v668_v23  ;;  %v2803_v28 = vpop.f32.mrb[22].mxu0  ;;  %v1091_v38 = vld [vmem:[#allocation2 + $0xca] sm:$0xff]  ;;  %v1036_v41 = vld [vmem:[#allocation2 + $0xc1] sm:$0xff] }
 0x157   : > { %947 = vst.msk [vmem:[#allocation2 + $0x100] sm:$0x3] %vm750_vm1, %v910_v20  ;;  %v1088_v29 = vld [vmem:[#allocation2 + $0xaa] sm:$0xff]  ;;  %v1089_v30 = vld [vmem:[#allocation2 + $0xb2] sm:$0xff]  ;;  %944 = vst.msk [vmem:[#allocation2 + $0xe8] sm:$0x3] %vm750_vm1, %v909_v25  ;;  %v680_v9 = vadd.f32 %v2803_v28, %v3568_v34  ;;  %v1118_v47 = vpack.c.bf16 %v1091_v38, %v1090_v37 }
 0x158   : > { %v1034_v31 = vld [vmem:[#allocation2 + $0xa9] sm:$0xff]  ;;  %943 = vst.msk [vmem:[#allocation2 + $0xe0] sm:$0xff] %vm747_vm0, %v815_v24  ;;  %v737_v6 = vmax.f32 %v677_v21, 0.0  ;;  %v671_v22 = vpop.f32.mrb[23].mxu0  ;;  %v1117_v26 = vpack.c.bf16 %v1089_v30, %v1088_v29  ;;  %v1035_v32 = vld [vmem:[#allocation2 + $0xb1] sm:$0xff]  ;;  %v735_v33 = vmax.f32 %v669_v27, 0.0 }
 0x159   : > { %v672_v35 = vadd.f32 %v3568_v34, %v671_v22  ;;  %v1063_v36 = vpack.c.bf16 %v1035_v32, %v1034_v31  ;;  %v738_v40 = vmax.f32 %v680_v9, 0.0  ;;  %v1037_v42 = vld [vmem:[#allocation2 + $0xc9] sm:$0xff] }
 0x15a   : > { %v822_v39 = vrot.slane %v737_v6, 7  ;;  %1206 = vrot.lane.b32.xlu1 %v1117_v26, %s3239_s16  ;;  %v819_v43 = vrot.slane %v735_v33, 7  ;;  %v1064_v51 = vpack.c.bf16 %v1037_v42, %v1036_v41 }
 0x15b   : > { %v736_v44 = vmax.f32 %v672_v35, 0.0  ;;  %1158 = vrot.lane.b32.xlu0 %v1063_v36, %s3240_s13  ;;  %v823_v46 = vrot.slane %v738_v40, 7 }
 0x15c   : > { %v896_v45 = vsel %vm788_vm2, 0.0, %v822_v39  ;;  %v895_v48 = vsel %vm788_vm2, 0.0, %v819_v43  ;;  %v2806_v50 = vpop.f32.mrb[24].mxu0 }
 0x15d   : > { %951 = vst.msk [vmem:[#allocation2 + $0x120] sm:$0xff] %vm747_vm0, %v896_v45  ;;  %v820_v49 = vrot.slane %v736_v44, 7  ;;  %948 = vst.msk [vmem:[#allocation2 + $0x108] sm:$0xff] %vm747_vm0, %v895_v48  ;;  %v824_v52 = vsel %vm788_vm2, %v822_v39, %v823_v46  ;;  %v912_v53 = vsel %vm788_vm2, %v823_v46, 0.0  ;;  %v693_v54 = vadd.f32 %v2806_v50, %v3568_v34  ;;  %v684_v55 = vpop.f32.mrb[25].mxu0  ;;  %v1040_v56 = vld [vmem:[#allocation2 + $0xf1] sm:$0xff] }
 0x15e   : > { %1208 = vrot.lane.b32.xlu1 %v1118_v47, %s3239_s16  ;;  %v1041_v57 = vld [vmem:[#allocation2 + $0xf9] sm:$0xff]  ;;  %952 = vst.msk [vmem:[#allocation2 + $0x128] sm:$0xff] %vm747_vm0, %v824_v52  ;;  %v685_v60 = vadd.f32 %v3568_v34, %v684_v55  ;;  %v2807_v61 = vpop.f32.mrb[26].mxu0 }
 0x15f   : > { %953 = vst.msk [vmem:[#allocation2 + $0x130] sm:$0x3] %vm750_vm1, %v912_v53  ;;  %v821_v58 = vsel %vm788_vm2, %v819_v43, %v820_v49  ;;  %v911_v59 = vsel %vm788_vm2, %v820_v49, 0.0  ;;  %1160 = vrot.lane.b32.xlu0 %v1064_v51, %s3240_s13  ;;  %v1066_v62 = vpack.c.bf16 %v1041_v57, %v1040_v56  ;;  %v1038_v63 = vld [vmem:[#allocation2 + $0xd9] sm:$0xff]  ;;  %v1039_v0 = vld [vmem:[#allocation2 + $0xe1] sm:$0xff]  ;;  %v741_v1 = vmax.f32 %v693_v54, 0.0 }
 0x160   : > { %949 = vst.msk [vmem:[#allocation2 + $0x110] sm:$0xff] %vm747_vm0, %v821_v58  ;;  %v696_v2 = vadd.f32 %v2807_v61, %v3568_v34  ;;  %v687_v3 = vpop.f32.mrb[27].mxu0  ;;  %v1065_v4 = vpack.c.bf16 %v1039_v0, %v1038_v63  ;;  %v739_v5 = vmax.f32 %v685_v60, 0.0  ;;  %v1094_v8 = vld [vmem:[#allocation2 + $0xf2] sm:$0xff]  ;;  %v1095_v10 = vld [vmem:[#allocation2 + $0xfa] sm:$0xff]  ;;  %v1093_v15 = vld [vmem:[#allocation2 + $0xe2] sm:$0xff] }
 0x161   : > { %950 = vst.msk [vmem:[#allocation2 + $0x118] sm:$0x3] %vm750_vm1, %v911_v59  ;;  %v688_v7 = vadd.f32 %v3568_v34, %v687_v3  ;;  %v828_v12 = vrot.slane %v741_v1, 7  ;;  %v1092_v14 = vld [vmem:[#allocation2 + $0xda] sm:$0xff]  ;;  %v1120_v20 = vpack.c.bf16 %v1095_v10, %v1094_v8 }
 0x162   : > { %v742_v13 = vmax.f32 %v696_v2, 0.0  ;;  %1164 = vrot.lane.b32.xlu1 %v1066_v62, %s3240_s13  ;;  %v825_v16 = vrot.slane %v739_v5, 7  ;;  %v1119_v25 = vpack.c.bf16 %v1093_v15, %v1092_v14 }
 0x163   : > { %v740_v17 = vmax.f32 %v688_v7, 0.0  ;;  %1162 = vrot.lane.b32.xlu0 %v1065_v4, %s3240_s13  ;;  %v898_v18 = vsel %vm788_vm2, 0.0, %v828_v12 }
 0x164   : > { %v829_v19 = vrot.slane %v742_v13, 7  ;;  %957 = vst.msk [vmem:[#allocation2 + $0x150] sm:$0xff] %vm747_vm0, %v898_v18  ;;  %v897_v21 = vsel %vm788_vm2, 0.0, %v825_v16  ;;  %v2810_v24 = vpop.f32.mrb[28].mxu0 }
 0x165   : > { %v826_v23 = vrot.slane %v740_v17, 7  ;;  %954 = vst.msk [vmem:[#allocation2 + $0x138] sm:$0xff] %vm747_vm0, %v897_v21  ;;  %v709_v29 = vadd.f32 %v2810_v24, %v3568_v34  ;;  %v700_v30 = vpop.f32.mrb[29].mxu0  ;;  %v1044_v31 = vld [vmem:[#allocation2 + $0x121] sm:$0xff]  ;;  %v1021_v24 = vld [vmem:[#allocation2 + $0x9] sm:$0xff] }
 0x166   : > { %v830_v27 = vsel %vm788_vm2, %v828_v12, %v829_v19  ;;  %v914_v28 = vsel %vm788_vm2, %v829_v19, 0.0  ;;  %1212 = vrot.lane.b32.xlu1 %v1120_v20, %s3239_s16  ;;  %v1045_v6 = vld [vmem:[#allocation2 + $0x129] sm:$0xff]  ;;  %v701_v26 = vadd.f32 %v3568_v34, %v700_v30  ;;  %v2811_v32 = vpop.f32.mrb[30].mxu0 }
 0x167   : > { %958 = vst.msk [vmem:[#allocation2 + $0x158] sm:$0xff] %vm747_vm0, %v830_v27  ;;  %v827_v9 = vsel %vm788_vm2, %v825_v16, %v826_v23  ;;  %v913_v22 = vsel %vm788_vm2, %v826_v23, 0.0  ;;  %1210 = vrot.lane.b32.xlu0 %v1119_v25, %s3239_s16  ;;  %v1068_v33 = vpack.c.bf16 %v1045_v6, %v1044_v31  ;;  %v1042_v35 = vld [vmem:[#allocation2 + $0x109] sm:$0xff]  ;;  %v745_v37 = vmax.f32 %v709_v29, 0.0  ;;  %v703_v39 = vpop.f32.mrb[31].mxu0  ;;  %v1020_v23 = vld [vmem:[#allocation2 + $0x1] sm:$0xff] }
 0x168   : > { %959 = vst.msk [vmem:[#allocation2 + $0x160] sm:$0x3] %vm750_vm1, %v914_v28  ;;  %v1043_v36 = vld [vmem:[#allocation2 + $0x111] sm:$0xff]  ;;  %956 = vst.msk [vmem:[#allocation2 + $0x148] sm:$0x3] %vm750_vm1, %v913_v22  ;;  %v712_v38 = vadd.f32 %v2811_v32, %v3568_v34  ;;  %v743_v41 = vmax.f32 %v701_v26, 0.0  ;;  %v704_v42 = vadd.f32 %v3568_v34, %v703_v39  ;;  %v1056_v29 = vpack.c.bf16 %v1021_v24, %v1020_v23 }
 0x169   : > { %955 = vst.msk [vmem:[#allocation2 + $0x140] sm:$0xff] %vm747_vm0, %v827_v9  ;;  %v1067_v40 = vpack.c.bf16 %v1043_v36, %v1042_v35  ;;  %v1098_v43 = vld [vmem:[#allocation2 + $0x122] sm:$0xff]  ;;  %v1099_v44 = vld [vmem:[#allocation2 + $0x12a] sm:$0xff]  ;;  %v834_v45 = vrot.slane %v745_v37, 7  ;;  %v1097_v48 = vld [vmem:[#allocation2 + $0x112] sm:$0xff] }
 0x16a   : > { %v746_v46 = vmax.f32 %v712_v38, 0.0  ;;  %1168 = vrot.lane.b32.xlu1 %v1068_v33, %s3240_s13  ;;  %v1096_v47 = vld [vmem:[#allocation2 + $0x10a] sm:$0xff]  ;;  %v831_v49 = vrot.slane %v743_v41, 7  ;;  %v744_v50 = vmax.f32 %v704_v42, 0.0  ;;  %v1122_v53 = vpack.c.bf16 %v1099_v44, %v1098_v43  ;;  %v1022_v27 = vld [vmem:[#allocation2 + $0x19] sm:$0xff]  ;;  %v1023_v28 = vld [vmem:[#allocation2 + $0x21] sm:$0xff] }
 0x16b   : > { %1166 = vrot.lane.b32.xlu0 %v1067_v40, %s3240_s13  ;;  %v900_v51 = vsel %vm788_vm2, 0.0, %v834_v45  ;;  %v1121_v55 = vpack.c.bf16 %v1097_v48, %v1096_v47  ;;  %v1057_v30 = vpack.c.bf16 %v1023_v28, %v1022_v27  ;;  %v1074_v31 = vld [vmem:[#allocation2 + $0x2] sm:$0xff]  ;;  %v1075_v6 = vld [vmem:[#allocation2 + $0xa] sm:$0xff]  ;;  %v1076_v9 = vld [vmem:[#allocation2 + $0x1a] sm:$0xff] }
 0x16c   : > { %v835_v52 = vrot.slane %v746_v46, 7  ;;  %963 = vst.msk [vmem:[#allocation2 + $0x180] sm:$0xff] %vm747_vm0, %v900_v51  ;;  %v899_v34 = vsel %vm788_vm2, 0.0, %v831_v49  ;;  %v832_v54 = vrot.slane %v744_v50, 7  ;;  %v1077_v22 = vld [vmem:[#allocation2 + $0x22] sm:$0xff]  ;;  %v1110_v26 = vpack.c.bf16 %v1075_v6, %v1074_v31  ;;  %v1027_v35 = vld [vmem:[#allocation2 + $0x51] sm:$0xff] }
 0x16d   : > { %960 = vst.msk [vmem:[#allocation2 + $0x168] sm:$0xff] %vm747_vm0, %v899_v34  ;;  %v1111_v32 = vpack.c.bf16 %v1077_v22, %v1076_v9  ;;  %v1026_v33 = vld [vmem:[#allocation2 + $0x49] sm:$0xff]  ;;  %v1024_v36 = vld [vmem:[#allocation2 + $0x31] sm:$0xff]  ;;  %v1025_v37 = vld [vmem:[#allocation2 + $0x39] sm:$0xff] }
 0x16e   : > { %v836_v56 = vsel %vm788_vm2, %v834_v45, %v835_v52  ;;  %v916_v57 = vsel %vm788_vm2, %v835_v52, 0.0  ;;  %1216 = vrot.lane.b32.xlu1 %v1122_v53, %s3239_s16  ;;  %v1048_v58 = vld [vmem:[#allocation2 + $0x151] sm:$0xff]  ;;  %v833_v60 = vsel %vm788_vm2, %v831_v49, %v832_v54  ;;  %v915_v61 = vsel %vm788_vm2, %v832_v54, 0.0  ;;  %v1079_v43 = vld [vmem:[#allocation2 + $0x3a] sm:$0xff]  ;;  %v1029_v49 = vld [vmem:[#allocation2 + $0x69] sm:$0xff] }
 0x16f   : > { %v1049_v59 = vld [vmem:[#allocation2 + $0x159] sm:$0xff]  ;;  %964 = vst.msk [vmem:[#allocation2 + $0x188] sm:$0xff] %vm747_vm0, %v836_v56  ;;  %1214 = vrot.lane.b32.xlu0 %v1121_v55, %s3239_s16  ;;  %961 = vst.msk [vmem:[#allocation2 + $0x170] sm:$0xff] %vm747_vm0, %v833_v60  ;;  %v1059_v38 = vpack.c.bf16 %v1027_v35, %v1026_v33  ;;  %v1058_v39 = vpack.c.bf16 %v1025_v37, %v1024_v36  ;;  %v1080_v40 = vld [vmem:[#allocation2 + $0x4a] sm:$0xff] }
 0x170   : > { %965 = vst.msk [vmem:[#allocation2 + $0x190] sm:$0x3] %vm750_vm1, %v916_v57  ;;  %v1070_v62 = vpack.c.bf16 %v1049_v59, %v1048_v58  ;;  %v1046_v63 = vld [vmem:[#allocation2 + $0x139] sm:$0xff]  ;;  %v1047_v0 = vld [vmem:[#allocation2 + $0x141] sm:$0xff]  ;;  %962 = vst.msk [vmem:[#allocation2 + $0x178] sm:$0x3] %vm750_vm1, %v915_v61 }
 0x171   : > { %v1069_v1 = vpack.c.bf16 %v1047_v0, %v1046_v63  ;;  %v1102_v2 = vld [vmem:[#allocation2 + $0x152] sm:$0xff]  ;;  %v1103_v3 = vld [vmem:[#allocation2 + $0x15a] sm:$0xff]  ;;  %v1101_v5 = vld [vmem:[#allocation2 + $0x142] sm:$0xff] }
 0x172   : > { %1172 = vrot.lane.b32.xlu1 %v1070_v62, %s3240_s13  ;;  %v1100_v4 = vld [vmem:[#allocation2 + $0x13a] sm:$0xff]  ;;  %v1124_v7 = vpack.c.bf16 %v1103_v3, %v1102_v2  ;;  %v1081_v41 = vld [vmem:[#allocation2 + $0x52] sm:$0xff]  ;;  %v1085_v53 = vld [vmem:[#allocation2 + $0x82] sm:$0xff] }
 0x173   : > { %1170 = vrot.lane.b32.xlu0 %v1069_v1, %s3240_s13  ;;  %v1123_v8 = vpack.c.bf16 %v1101_v5, %v1100_v4  ;;  %v1078_v42 = vld [vmem:[#allocation2 + $0x32] sm:$0xff]  ;;  %v1113_v44 = vpack.c.bf16 %v1081_v41, %v1080_v40  ;;  %v1031_v47 = vld [vmem:[#allocation2 + $0x81] sm:$0xff]  ;;  %v1083_v54 = vld [vmem:[#allocation2 + $0x6a] sm:$0xff] }
 0x174   : > { %v1112_v45 = vpack.c.bf16 %v1079_v43, %v1078_v42  ;;  %v1030_v46 = vld [vmem:[#allocation2 + $0x79] sm:$0xff]  ;;  %v1028_v48 = vld [vmem:[#allocation2 + $0x61] sm:$0xff]  ;;  %v1032_v59 = vld [vmem:[#allocation2 + $0x91] sm:$0xff] }
 0x175   : > { %v1061_v50 = vpack.c.bf16 %v1031_v47, %v1030_v46  ;;  %v1060_v51 = vpack.c.bf16 %v1029_v49, %v1028_v48  ;;  %v1084_v52 = vld [vmem:[#allocation2 + $0x7a] sm:$0xff]  ;;  %v1082_v34 = vld [vmem:[#allocation2 + $0x62] sm:$0xff]  ;;  %v1086_v57 = vld [vmem:[#allocation2 + $0x92] sm:$0xff] }
 0x176   : > { %1220 = vrot.lane.b32.xlu1 %v1124_v7, %s3239_s16  ;;  %v1104_v10 = vld [vmem:[#allocation2 + $0x16a] sm:$0xff]  ;;  %v1106_v17 = vld [vmem:[#allocation2 + $0x182] sm:$0xff]  ;;  %v1115_v55 = vpack.c.bf16 %v1085_v53, %v1084_v52  ;;  %v1114_v56 = vpack.c.bf16 %v1083_v54, %v1082_v34  ;;  %v1087_v58 = vld [vmem:[#allocation2 + $0x9a] sm:$0xff] }
 0x177   : > { %1218 = vrot.lane.b32.xlu0 %v1123_v8, %s3239_s16  ;;  %v1105_v12 = vld [vmem:[#allocation2 + $0x172] sm:$0xff]  ;;  %v1050_v13 = vld [vmem:[#allocation2 + $0x169] sm:$0xff]  ;;  %v1052_v19 = vld [vmem:[#allocation2 + $0x181] sm:$0xff]  ;;  %v1116_v63 = vpack.c.bf16 %v1087_v58, %v1086_v57 }
 0x178   : > { %v1125_v14 = vpack.c.bf16 %v1105_v12, %v1104_v10  ;;  %v1051_v15 = vld [vmem:[#allocation2 + $0x171] sm:$0xff]  ;;  %v1053_v20 = vld [vmem:[#allocation2 + $0x189] sm:$0xff]  ;;  %v1033_v60 = vld [vmem:[#allocation2 + $0x99] sm:$0xff] }
 0x179   : > { %v1071_v16 = vpack.c.bf16 %v1051_v15, %v1050_v13  ;;  %v1107_v18 = vld [vmem:[#allocation2 + $0x18a] sm:$0xff]  ;;  %v1072_v25 = vpack.c.bf16 %v1053_v20, %v1052_v19  ;;  %v1108_v61 = vld [vmem:[#allocation2 + $0x19a] sm:$0xff]  ;;  %v1109_v62 = vld [vmem:[#allocation2 + $0x1a2] sm:$0xff]  ;;  %v1062_v2 = vpack.c.bf16 %v1033_v60, %v1032_v59 }
 0x17a   : > { %1222 = vrot.lane.b32.xlu1 %v1125_v14, %s3239_s16  ;;  %v1126_v21 = vpack.c.bf16 %v1107_v18, %v1106_v17  ;;  %v1054_v0 = vld [vmem:[#allocation2 + $0x199] sm:$0xff]  ;;  %v1055_v1 = vld [vmem:[#allocation2 + $0x1a1] sm:$0xff]  ;;  %v1127_v3 = vpack.c.bf16 %v1109_v62, %v1108_v61  ;;  %v981_v5 = vld [vmem:[#allocation2 + $0xb0] sm:$0xff] }
 0x17b   : > { %1174 = vrot.lane.b32.xlu0 %v1071_v16, %s3240_s13  ;;  %v1073_v4 = vpack.c.bf16 %v1055_v1, %v1054_v0  ;;  %v980_v7 = vld [vmem:[#allocation2 + $0xa8] sm:$0xff]  ;;  %v982_v16 = vld [vmem:[#allocation2 + $0xc0] sm:$0xff]  ;;  %v987_v24 = vld [vmem:[#allocation2 + $0xf8] sm:$0xff] }
 0x17c   : > { %v1009_v10 = vpack.c.bf16 %v981_v5, %v980_v7  ;;  %v983_v13 = vld [vmem:[#allocation2 + $0xc8] sm:$0xff]  ;;  %v985_v27 = vld [vmem:[#allocation2 + $0xe0] sm:$0xff]  ;;  %v986_v28 = vld [vmem:[#allocation2 + $0xf0] sm:$0xff] }
 0x17d   : > { %v1010_v18 = vpack.c.bf16 %v983_v13, %v982_v16  ;;  %v984_v31 = vld [vmem:[#allocation2 + $0xd8] sm:$0xff]  ;;  %v3125_v6 = vld [vmem:[%s4090_s2 + $0x10] sm:$0xff]   ;;  %v991_v37 = vld [vmem:[#allocation2 + $0x128] sm:$0xff] }
 0x17e   : > { %1321 = vrot.lane.b32.xlu1 %v1126_v21, %s3239_s16  ;;  %v3124_v21 = vld [vmem:[%s4090_s2 + $0x8] sm:$0xff]   ;;  %v1011_v9 = vpack.c.bf16 %v985_v27, %v984_v31  ;;  %v3126_v36 = vld [vmem:[%s4090_s2 + $0x18] sm:$0xff]   ;;  %v990_v40 = vld [vmem:[#allocation2 + $0x120] sm:$0xff] }
 0x17f   : > { %1318 = vrot.lane.b32.xlu0 %v1072_v25, %s3240_s13  ;;  %v1014_v42 = vpack.c.bf16 %v991_v37, %v990_v40  ;;  %v988_v43 = vld [vmem:[#allocation2 + $0x108] sm:$0xff]  ;;  %v995_v53 = vld [vmem:[#allocation2 + $0x158] sm:$0xff]  ;;  %v993_v54 = vld [vmem:[#allocation2 + $0x140] sm:$0xff] }
 0x180   : > { %v3128_v52 = vld [vmem:[%s4090_s2 + $0x28] sm:$0xff]   ;;  %v992_v58 = vld [vmem:[#allocation2 + $0x138] sm:$0xff]  ;;  %v3129_v59 = vld [vmem:[%s4090_s2 + $0x60] sm:$0xff]  }
 0x181   : > { %v1015_v60 = vpack.c.bf16 %v993_v54, %v992_v58  ;;  %v973_v37 = vld [vmem:[#allocation2 + $0x50] sm:$0xff]  ;;  %v977_v54 = vld [vmem:[#allocation2 + $0x80] sm:$0xff]  ;;  %v976_v58 = vld [vmem:[#allocation2 + $0x78] sm:$0xff] }
 0x182   : > { %1146 = vrot.lane.b32.xlu1 %v1057_v30, %s3240_s13  ;;  %v1012_v30 = vpack.c.bf16 %v987_v24, %v986_v28 }
 0x183   : > { %1144 = vrot.lane.b32.xlu0 %v1056_v29, %s3240_s13 }
 0x186   : > { %1194 = vrot.lane.b32.xlu1 %v1111_v32, %s3239_s16 }
 0x187   : > { %1192 = vrot.lane.b32.xlu0 %v1110_v26, %s3239_s16 }
 0x18a   : > { %1150 = vrot.lane.b32.xlu1 %v1059_v38, %s3240_s13 }
 0x18b   : > { %1148 = vrot.lane.b32.xlu0 %v1058_v39, %s3240_s13  ;;  %v989_v39 = vld [vmem:[#allocation2 + $0x110] sm:$0xff] }
 0x18e   : > { %1198 = vrot.lane.b32.xlu1 %v1113_v44, %s3239_s16  ;;  %v3127_v44 = vld [vmem:[%s4090_s2 + $0x20] sm:$0xff]  }
 0x18f   : > { %1196 = vrot.lane.b32.xlu0 %v1112_v45, %s3239_s16  ;;  %v1013_v45 = vpack.c.bf16 %v989_v39, %v988_v43 }
 0x192   : > { %1154 = vrot.lane.b32.xlu1 %v1061_v50, %s3240_s13 }
 0x193   : > { %1152 = vrot.lane.b32.xlu0 %v1060_v51, %s3240_s13 }
 0x196   : > { %1202 = vrot.lane.b32.xlu1 %v1115_v55, %s3239_s16  ;;  %v994_v55 = vld [vmem:[#allocation2 + $0x150] sm:$0xff] }
 0x197   : > { %1200 = vrot.lane.b32.xlu0 %v1114_v56, %s3239_s16  ;;  %v1016_v57 = vpack.c.bf16 %v995_v53, %v994_v55  ;;  %v975_v55 = vld [vmem:[#allocation2 + $0x68] sm:$0xff] }
 0x19a   : > { %1204 = vrot.lane.b32.xlu1 %v1116_v63, %s3239_s16 }
 0x19b   : > { %1156 = vrot.lane.b32.xlu0 %v1062_v2, %s3240_s13  ;;  %v997_v2 = vld [vmem:[#allocation2 + $0x170] sm:$0xff] }
 0x19e   : > { %1774 = vrot.lane.b32.xlu1 %v1127_v3, %s3239_s16  ;;  %s3975_s16 = scalar_lea.vmem [#allocation6], %s2527_s23  ;;  %s2655_s23 = sshll.u32 %s3310_s9, 12 }
 0x19f   : > { %1771 = vrot.lane.b32.xlu0 %v1073_v4, %s3240_s13  ;;  %v996_v4 = vld [vmem:[#allocation2 + $0x168] sm:$0xff]  ;;  %s2447_s13 = sshll.u32 %s3975_s16, 4  ;;  %s4039_s24 = scalar_lea.hbm %s4096_s8, %s2655_s23  ;;  %s4041_s13 = int_to_ptr.vmem [resolvable:$true] %s2447_s13 }
 0x1a0   : > { %v1017_v7 = vpack.c.bf16 %v997_v2, %v996_v4  ;;  %s2434_s9 = scalar_lea.sflag [#allocation5], %s3393_s22  ;;  %p3174_p8 = scmp.lt.s32.totalorder %s4041_s13, %s3172_s10 }
 0x1cc   : > { %v1207_v8 = vpop.permute.xlu1 %1206 }
 0x1cd   : > { %v1159_v12 = vpop.permute.xlu0 %1158 }
 0x1ce   : > { %v1247_v14 = vsel %vm747_vm0, %v1009_v10, %v1159_v12  ;;  %v999_v10 = vld [vmem:[#allocation2 + $0x188] sm:$0xff] }
 0x1cf   : > { %v3745_v15 = vsel %vm1272_vm3, %v1247_v14, %v1207_v8  ;;  %v998_v14 = vld [vmem:[#allocation2 + $0x180] sm:$0xff] }
 0x1d0   : > { %2836 = vmatprep.mubr.msk.bf16.mxu1 %vm1377_vm4, %v3745_v15  ;;  %v1209_v17 = vpop.permute.xlu1 %1208 }
 0x1d1   : > { %v1161_v19 = vpop.permute.xlu0 %1160 }
 0x1d2   : > { %v1250_v20 = vsel %vm747_vm0, %v1010_v18, %v1161_v19 }
 0x1d3   : > { %v3754_v23 = vsel %vm1272_vm3, %v1250_v20, %v1209_v17  ;;  %v1018_v17 = vpack.c.bf16 %v999_v10, %v998_v14  ;;  %v966_v20 = vld [vmem:[#allocation2] sm:$0xff]  ;;  %v3134_v10 = vld [vmem:[%s4090_s2 + $0x88] sm:$0xff]  }
 0x1d4   : > { %2837 = vmatmul.mubr.msk.bf16.vlgmr.msra.gmra.mrb[0].mxu1 %vm1377_vm4, %v3754_v23  ;;  %v1165_v25 = vpop.permute.xlu1 %1164 }
 0x1d5   : > { %2857 = vmatpush3.bf16.msra.mxu1 %v3644_v11  ;;  %v1163_v29 = vpop.permute.xlu0 %1162  ;;  %v1256_v22 = vsel %vm747_vm0, %v1012_v30, %v1165_v25  ;;  %v969_v25 = vld [vmem:[#allocation2 + $0x20] sm:$0xff]  ;;  %v968_v30 = vld [vmem:[#allocation2 + $0x18] sm:$0xff] }
 0x1d6   : > { %2858 = vmatprep.subr.bf16.mxu1 %v3124_v21  ;;  %v1253_v32 = vsel %vm747_vm0, %v1011_v9, %v1163_v29  ;;  %v1003_v31 = vpack.c.bf16 %v969_v25, %v968_v30 }
 0x1d8   : > { %v1213_v26 = vpop.permute.xlu1 %1212 }
 0x1d9   : > { %v3765_v33 = vsel %vm1272_vm3, %v1256_v22, %v1213_v26  ;;  %v1211_v35 = vpop.permute.xlu0 %1210  ;;  %2859 = vmatpush3.bf16.msra.mxu1 %v3124_v21  ;;  %v967_v21 = vld [vmem:[#allocation2 + $0x8] sm:$0xff] }
 0x1da   : > { %v3768_v11 = vsel %vm1272_vm3, %v1253_v32, %v1211_v35  ;;  %2860 = vmatprep.subr.bf16.mxu1 %v3125_v6  ;;  %v1002_v28 = vpack.c.bf16 %v967_v21, %v966_v20 }
 0x1db   : > { %2840 = vmatprep.mubr.msk.bf16.mxu1 %vm1377_vm4, %v3768_v11 }
 0x1dc   : > { %2841 = vmatmul.mubr.msk.bf16.gmra.mrb[4].mxu1 %vm1377_vm4, %v3765_v33  ;;  %v1169_v38 = vpop.permute.xlu1 %1168 }
 0x1dd   : > { %v1167_v41 = vpop.permute.xlu0 %1166  ;;  %2861 = vmatpush3.bf16.msra.mxu1 %v3125_v6  ;;  %v1262_v46 = vsel %vm747_vm0, %v1014_v42, %v1169_v38  ;;  %v971_v38 = vld [vmem:[#allocation2 + $0x38] sm:$0xff]  ;;  %v970_v42 = vld [vmem:[#allocation2 + $0x30] sm:$0xff] }
 0x1de   : > { %2862 = vmatprep.subr.bf16.mxu1 %v3126_v36  ;;  %v1259_v48 = vsel %vm747_vm0, %v1013_v45, %v1167_v41  ;;  %v972_v41 = vld [vmem:[#allocation2 + $0x48] sm:$0xff]  ;;  %v1004_v45 = vpack.c.bf16 %v971_v38, %v970_v42 }
 0x1df   : > { %v1005_v43 = vpack.c.bf16 %v973_v37, %v972_v41 }
 0x1e0   : > { %v1217_v47 = vpop.permute.xlu1 %1216 }
 0x1e1   : > { %v3783_v49 = vsel %vm1272_vm3, %v1262_v46, %v1217_v47  ;;  %v1215_v50 = vpop.permute.xlu0 %1214  ;;  %2863 = vmatpush3.bf16.msra.mxu1 %v3126_v36  ;;  %v3130_v36 = vld [vmem:[%s4090_s2 + $0x68] sm:$0xff]  }
 0x1e2   : > { %v3786_v51 = vsel %vm1272_vm3, %v1259_v48, %v1215_v50  ;;  %2864 = vmatprep.subr.bf16.mxu1 %v3127_v44 }
 0x1e3   : > { %2844 = vmatprep.mubr.msk.bf16.mxu1 %vm1377_vm4, %v3786_v51 }
 0x1e4   : > { %2845 = vmatmul.mubr.msk.bf16.gmra.mrb[8].mxu1 %vm1377_vm4, %v3783_v49  ;;  %v1173_v34 = vpop.permute.xlu1 %1172 }
 0x1e5   : > { %v1171_v56 = vpop.permute.xlu0 %1170  ;;  %2865 = vmatpush3.bf16.msra.mxu1 %v3127_v44  ;;  %v1268_v61 = vsel %vm747_vm0, %v1016_v57, %v1173_v34  ;;  %v3131_v44 = vld [vmem:[%s4090_s2 + $0x70] sm:$0xff]   ;;  %v3132_v34 = vld [vmem:[%s4090_s2 + $0x78] sm:$0xff]  }
 0x1e6   : > { %2866 = vmatprep.subr.bf16.mxu1 %v3128_v52  ;;  %v1265_v63 = vsel %vm747_vm0, %v1015_v60, %v1171_v56  ;;  %v1007_v60 = vpack.c.bf16 %v977_v54, %v976_v58 }
 0x1e8   : > { %v1221_v62 = vpop.permute.xlu1 %1220 }
 0x1e9   : > { %v3801_v0 = vsel %vm1272_vm3, %v1268_v61, %v1221_v62  ;;  %v1219_v1 = vpop.permute.xlu0 %1218  ;;  %2867 = vmatpush3.bf16.msra.mxu1 %v3128_v52  ;;  %v3133_v61 = vld [vmem:[%s4090_s2 + $0x80] sm:$0xff]  }
 0x1ea   : > { %v3804_v3 = vsel %vm1272_vm3, %v1265_v63, %v1219_v1  ;;  %2900 = vmatprep.subr.bf16.mxu1 %v3129_v59 }
 0x1eb   : > { %2848 = vmatprep.mubr.msk.bf16.mxu1 %vm1377_vm4, %v3804_v3 }
 0x1ec   : > { %2849 = vmatmul.mubr.msk.bf16.gmra.mrb[12].mxu1 %vm1377_vm4, %v3801_v0  ;;  %v1223_v5 = vpop.permute.xlu1 %1222 }
 0x1ed   : > { %v1175_v8 = vpop.permute.xlu0 %1174 }
 0x1ee   : > { %v1271_v12 = vsel %vm747_vm0, %v1017_v7, %v1175_v8  ;;  %v979_v7 = vld [vmem:[#allocation2 + $0x98] sm:$0xff] }
 0x1ef   : > { %v3812_v13 = vsel %vm1272_vm3, %v1271_v12, %v1223_v5  ;;  %v978_v12 = vld [vmem:[#allocation2 + $0x90] sm:$0xff] }
 0x1f0   : > { %2852 = vmatprep.mubr.msk.bf16.mxu1 %vm1377_vm4, %v3812_v13  ;;  %v1322_v16 = vpop.permute.xlu1 %1321  ;;  %v1008_v14 = vpack.c.bf16 %v979_v7, %v978_v12 }
 0x1f1   : > { %v1319_v18 = vpop.permute.xlu0 %1318 }
 0x1f2   : > { %v1325_v19 = vsel %vm747_vm0, %v1018_v17, %v1319_v18 }
 0x1f3   : > { %v3818_v24 = vsel %vm1272_vm3, %v1325_v19, %v1322_v16 }
 0x1f4   : > { %2853 = vmatmul.mubr.msk.bf16.gmra.mrb[16].mxu1 %vm1377_vm4, %v3818_v24  ;;  %v1147_v27 = vpop.permute.xlu1 %1146 }
 0x1f5   : > { %v1145_v29 = vpop.permute.xlu0 %1144  ;;  %v1229_v6 = vsel %vm747_vm0, %v1003_v31, %v1147_v27 }
 0x1f6   : > { %v1226_v22 = vsel %vm747_vm0, %v1002_v28, %v1145_v29 }
 0x1f8   : > { %v1195_v9 = vpop.permute.xlu1 %1194 }
 0x1f9   : > { %v1193_v26 = vpop.permute.xlu0 %1192  ;;  %v1276_v32 = vsel %vm1272_vm3, %v1229_v6, %v1195_v9 }
 0x1fa   : > { %v1274_v35 = vsel %vm1272_vm3, %v1226_v22, %v1193_v26  ;;  %2824 = vmatprep.mubr.msk.bf16.mxu0 %vm1377_vm4, %v1276_v32 }
 0x1fb   : > { %2868 = vmatprep.mubr.msk.bf16.mxu1 %vm1377_vm4, %v1274_v35 }
 0x1fc   : > { %2869 = vmatmul.mubr.msk.bf16.vlgmr.msra.gmra.mrb[20].mxu1 %vm1377_vm4, %v1276_v32  ;;  %v1151_v39 = vpop.permute.xlu1 %1150  ;;  %v3919_v32 = vld [vmem:[%s4095_s7] ss:$0 sm:$0xff] }
 0x1fd   : > { %2901 = vmatpush3.bf16.msra.mxu1 %v3129_v59  ;;  %v1149_v40 = vpop.permute.xlu0 %1148  ;;  %v1235_v46 = vsel %vm747_vm0, %v1005_v43, %v1151_v39  ;;  %v974_v59 = vld [vmem:[#allocation2 + $0x60] sm:$0xff] }
 0x1fe   : > { %2902 = vmatprep.subr.bf16.mxu1 %v3130_v36  ;;  %v1232_v48 = vsel %vm747_vm0, %v1004_v45, %v1149_v40  ;;  %v1006_v62 = vpack.c.bf16 %v975_v55, %v974_v59 }
 0x200   : > { %v1199_v47 = vpop.permute.xlu1 %1198 }
 0x201   : > { %v1197_v50 = vpop.permute.xlu0 %1196  ;;  %v1280_v52 = vsel %vm1272_vm3, %v1235_v46, %v1199_v47  ;;  %2903 = vmatpush3.bf16.msra.mxu1 %v3130_v36 }
 0x202   : > { %v1278_v53 = vsel %vm1272_vm3, %v1232_v48, %v1197_v50  ;;  %2904 = vmatprep.subr.bf16.mxu1 %v3131_v44 }
 0x203   : > { %2825 = vmatmul.mubr.msk.bf16.vlgmr.msra.gmra.mrb[32].mxu0 %vm1377_vm4, %v1278_v53  ;;  %2872 = vmatprep.mubr.msk.bf16.mxu1 %vm1377_vm4, %v1278_v53 }
 0x204   : > { %2828 = vmatprep.mubr.msk.bf16.mxu0 %vm1377_vm4, %v1280_v52  ;;  %2873 = vmatmul.mubr.msk.bf16.gmra.mrb[24].mxu1 %vm1377_vm4, %v1280_v52  ;;  %v1155_v56 = vpop.permute.xlu1 %1154 }
 0x205   : > { %v1153_v57 = vpop.permute.xlu0 %1152  ;;  %2905 = vmatpush3.bf16.msra.mxu1 %v3131_v44  ;;  %v1241_v63 = vsel %vm747_vm0, %v1007_v60, %v1155_v56 }
 0x206   : > { %2906 = vmatprep.subr.bf16.mxu1 %v3132_v34  ;;  %v1238_v2 = vsel %vm747_vm0, %v1006_v62, %v1153_v57 }
 0x208   : > { %v1203_v1 = vpop.permute.xlu1 %1202 }
 0x209   : > { %v1201_v4 = vpop.permute.xlu0 %1200  ;;  %v1284_v5 = vsel %vm1272_vm3, %v1241_v63, %v1203_v1  ;;  %2907 = vmatpush3.bf16.msra.mxu1 %v3132_v34 }
 0x20a   : > { %v1282_v8 = vsel %vm1272_vm3, %v1238_v2, %v1201_v4  ;;  %2908 = vmatprep.subr.bf16.mxu1 %v3133_v61 }
 0x20b   : > { %2829 = vmatmul.mubr.msk.bf16.gmra.mrb[36].mxu0 %vm1377_vm4, %v1282_v8  ;;  %2876 = vmatprep.mubr.msk.bf16.mxu1 %vm1377_vm4, %v1282_v8 }
 0x20c   : > { %2832 = vmatprep.mubr.msk.bf16.mxu0 %vm1377_vm4, %v1284_v5  ;;  %2877 = vmatmul.mubr.msk.bf16.gmra.mrb[28].mxu1 %vm1377_vm4, %v1284_v5  ;;  %v1205_v16 = vpop.permute.xlu1 %1204 }
 0x20d   : > { %v1157_v17 = vpop.permute.xlu0 %1156  ;;  %2909 = vmatpush3.bf16.msra.mxu1 %v3133_v61 }
 0x20e   : > { %v1244_v18 = vsel %vm747_vm0, %v1008_v14, %v1157_v17  ;;  %2910 = vmatprep.subr.bf16.mxu1 %v3134_v10 }
 0x20f   : > { %v1286_v19 = vsel %vm1272_vm3, %v1244_v18, %v1205_v16 }
 0x210   : > { %2880 = vmatprep.mubr.msk.bf16.mxu1 %vm1377_vm4, %v1286_v19 }
 0x211   : > { %2911 = vmatpush3.bf16.msra.mxu1 %v3134_v10 }
 0x213   : > { %2833 = vmatmul.mubr.msk.bf16.gmra.mrb[40].mxu0 %vm1377_vm4, %v1286_v19 }
 0x214   : > { %2881 = vmatmul.mubr.msk.bf16.gmra.mrb[0].mxu1 %vm1377_vm4, %v3745_v15 }
 0x215   : > { %2884 = vmatprep.mubr.msk.bf16.mxu1 %vm1377_vm4, %v3754_v23 }
 0x21c   : > { %2885 = vmatmul.mubr.msk.bf16.gmra.mrb[4].mxu1 %vm1377_vm4, %v3768_v11 }
 0x21d   : > { %2888 = vmatprep.mubr.msk.bf16.mxu1 %vm1377_vm4, %v3765_v33 }
 0x224   : > { %2889 = vmatmul.mubr.msk.bf16.gmra.mrb[8].mxu1 %vm1377_vm4, %v3786_v51 }
 0x225   : > { %2892 = vmatprep.mubr.msk.bf16.mxu1 %vm1377_vm4, %v3783_v49 }
 0x22c   : > { %2893 = vmatmul.mubr.msk.bf16.gmra.mrb[12].mxu1 %vm1377_vm4, %v3804_v3 }
 0x22d   : > { %2896 = vmatprep.mubr.msk.bf16.mxu1 %vm1377_vm4, %v3801_v0 }
 0x234   : > { %2897 = vmatmul.mubr.msk.bf16.gmra.mrb[16].mxu1 %vm1377_vm4, %v3812_v13 }
 0x235   : > { %2912 = vmatprep.mubr.msk.bf16.mxu1 %vm1377_vm4, %v1278_v53 }
 0x23c   : > { %2913 = vmatmul.mubr.msk.bf16.vlgmr.msra.gmra.mrb[20].mxu1 %vm1377_vm4, %v1280_v52 }
 0x23d   : > { %2916 = vmatprep.mubr.msk.bf16.mxu1 %vm1377_vm4, %v1282_v8 }
 0x244   : > { %2917 = vmatmul.mubr.msk.bf16.gmra.mrb[24].mxu1 %vm1377_vm4, %v1284_v5 }
 0x245   : > { %2920 = vmatprep.mubr.msk.bf16.mxu1 %vm1377_vm4, %v1286_v19 }
 0x24c   : > { %2921 = vmatmul.mubr.msk.bf16.gmra.mrb[28].mxu1 %vm1377_vm4, %v3745_v15  ;;  %v1000_v15 = vld [vmem:[#allocation2 + $0x198] sm:$0xff] }
 0x24d   : > { %2924 = vmatprep.mubr.msk.bf16.mxu1 %vm1377_vm4, %v3754_v23  ;;  %v1001_v23 = vld [vmem:[#allocation2 + $0x1a0] sm:$0xff] }
 0x24e   : > { %v1019_v20 = vpack.c.bf16 %v1001_v23, %v1000_v15 }
 0x254   : > { %2925 = vmatmul.mubr.msk.bf16.gmra.mrb[0].mxu1 %vm1377_vm4, %v3768_v11  ;;  %v3135_v11 = vld [vmem:[%s4091_s3] sm:$0xff]  }
 0x255   : > { %2928 = vmatprep.mubr.msk.bf16.mxu1 %vm1377_vm4, %v3765_v33  ;;  %v1772_v33 = vpop.permute.xlu0 %1771  ;;  %2944 = vmatprep.subr.bf16.mxu0 %v3135_v11 }
 0x256   : > { %2945 = vmatpush3.bf16.msra.mxu0 %v3135_v11 }
 0x25c   : > { %2929 = vmatmul.mubr.msk.bf16.gmra.mrb[4].mxu1 %vm1377_vm4, %v3786_v51  ;;  %v1775_v51 = vpop.permute.xlu1 %1774 }
 0x25d   : > { %2932 = vmatprep.mubr.msk.bf16.mxu1 %vm1377_vm4, %v3783_v49  ;;  %v1778_v49 = vsel %vm747_vm0, %v1019_v20, %v1772_v33 }
 0x264   : > { %2933 = vmatmul.mubr.msk.bf16.gmra.mrb[8].mxu1 %vm1377_vm4, %v3804_v3  ;;  %v3136_v3 = vld [vmem:[%s4091_s3 + $0x8] sm:$0xff]  }
 0x265   : > { %2936 = vmatprep.mubr.msk.bf16.mxu1 %vm1377_vm4, %v3801_v0  ;;  %v1780_v0 = vsel %vm1272_vm3, %v1778_v49, %v1775_v51  ;;  %2946 = vmatprep.subr.bf16.mxu0 %v3136_v3 }
 0x266   : > { %2947 = vmatpush3.bf16.msra.mxu0 %v3136_v3 }
 0x26c   : > { %2937 = vmatmul.mubr.msk.bf16.gmra.mrb[12].mxu1 %vm1377_vm4, %v3812_v13 }
 0x26d   : > { %2940 = vmatprep.mubr.msk.bf16.mxu1 %vm1377_vm4, %v3818_v24 }
 0x274   : > { %2941 = vmatmul.mubr.msk.bf16.gmra.mrb[16].mxu1 %vm1377_vm4, %v1780_v0 }
 0x2d6   : > { %v2826_v21 = vpop.f32.mrb[32].mxu0 }
 0x2d7   : > { %v1444_v25 = vpop.f32.mrb[33].mxu0 }
 0x2d8   : > { %v2827_v13 = vpop.f32.mrb[34].mxu0 }
 0x2d9   : > { %v1447_v27 = vpop.f32.mrb[35].mxu0 }
 0x2de   : > { %v2830_v28 = vpop.f32.mrb[36].mxu0 }
 0x2df   : > { %v1460_v29 = vpop.f32.mrb[37].mxu0 }
 0x2e0   : > { %v2831_v24 = vpop.f32.mrb[38].mxu0 }
 0x2e1   : > { %v1463_v30 = vpop.f32.mrb[39].mxu0 }
 0x2e6   : > { %v2834_v31 = vpop.f32.mrb[40].mxu0 }
 0x2e7   : > { %v1476_v6 = vpop.f32.mrb[41].mxu0 }
 0x2e8   : > { %v2835_v9 = vpop.f32.mrb[42].mxu0 }
 0x2e9   : > { %v1479_v22 = vpop.f32.mrb[43].mxu0 }
 0x30f   : > { %v2914_v26 = vpop.f32.mrb[20].mxu1 }
 0x310   : > { %v2992_v35 = vadd.f32 %v2914_v26, %v2826_v21  ;;  %v1866_v36 = vpop.f32.mrb[21].mxu1 }
 0x311   : > { %v2993_v37 = vadd.f32 %v1866_v36, %v1444_v25  ;;  %v2915_v38 = vpop.f32.mrb[22].mxu1 }
 0x312   : > { %v2034_v39 = vadd.f32 %v2992_v35, %v3919_v32  ;;  %v2994_v40 = vadd.f32 %v2915_v38, %v2827_v13  ;;  %v1869_v41 = vpop.f32.mrb[23].mxu1 }
 0x313   : > { %v2032_v42 = vadd.f32 %v2993_v37, %v3919_v32  ;;  %v2995_v43 = vadd.f32 %v1869_v41, %v1447_v27 }
 0x314   : > { %v2035_v44 = vadd.f32 %v2994_v40, %v3919_v32  ;;  %v2066_v46 = vmax.f32 %v2034_v39, 0.0 }
 0x315   : > { %v2033_v45 = vadd.f32 %v2995_v43, %v3919_v32  ;;  %v2064_v48 = vmax.f32 %v2032_v42, 0.0 }
 0x316   : > { %v2067_v47 = vmax.f32 %v2035_v44, 0.0 }
 0x317   : > { %v2065_v50 = vmax.f32 %v2033_v45, 0.0  ;;  %v2918_v52 = vpop.f32.mrb[24].mxu1 }
 0x318   : > { %v2097_v53 = vpack.c.bf16 %v2067_v47, %v2066_v46  ;;  %v2996_v34 = vadd.f32 %v2918_v52, %v2830_v28  ;;  %v1882_v54 = vpop.f32.mrb[25].mxu1 }
 0x319   : > { %v2096_v55 = vpack.c.bf16 %v2065_v50, %v2064_v48  ;;  %v2997_v56 = vadd.f32 %v1882_v54, %v1460_v29  ;;  %v2919_v57 = vpop.f32.mrb[26].mxu1 }
 0x31a   : > { %v2038_v58 = vadd.f32 %v2996_v34, %v3919_v32  ;;  %v2998_v59 = vadd.f32 %v2919_v57, %v2831_v24  ;;  %v1885_v60 = vpop.f32.mrb[27].mxu1 }
 0x31b   : > { %v2036_v61 = vadd.f32 %v2997_v56, %v3919_v32  ;;  %v2999_v62 = vadd.f32 %v1885_v60, %v1463_v30  ;;  %2948 = vmatprep.mubr.msk.bf16.mxu0 %vm747_vm0, %v2096_v55 }
 0x31c   : > { %v2039_v63 = vadd.f32 %v2998_v59, %v3919_v32  ;;  %2949 = vmatmul.mubr.msk.bf16.vlgmr.msra.gmra.mrb[44].mxu0 %vm747_vm0, %v2097_v53  ;;  %v2070_v2 = vmax.f32 %v2038_v58, 0.0 }
 0x31d   : > { %v2037_v1 = vadd.f32 %v2999_v62, %v3919_v32  ;;  %v2068_v5 = vmax.f32 %v2036_v61, 0.0 }
 0x31e   : > { %v2071_v4 = vmax.f32 %v2039_v63, 0.0 }
 0x31f   : > { %v2069_v7 = vmax.f32 %v2037_v1, 0.0  ;;  %v2922_v8 = vpop.f32.mrb[28].mxu1 }
 0x320   : > { %v2099_v10 = vpack.c.bf16 %v2071_v4, %v2070_v2  ;;  %v3000_v12 = vadd.f32 %v2922_v8, %v2834_v31  ;;  %v1898_v14 = vpop.f32.mrb[29].mxu1 }
 0x321   : > { %v2098_v16 = vpack.c.bf16 %v2069_v7, %v2068_v5  ;;  %v3001_v17 = vadd.f32 %v1898_v14, %v1476_v6  ;;  %v2923_v18 = vpop.f32.mrb[30].mxu1 }
 0x322   : > { %v2042_v19 = vadd.f32 %v3000_v12, %v3919_v32  ;;  %v3002_v15 = vadd.f32 %v2923_v18, %v2835_v9  ;;  %v1901_v23 = vpop.f32.mrb[31].mxu1 }
 0x323   : > { %v2040_v11 = vadd.f32 %v3001_v17, %v3919_v32  ;;  %v3003_v20 = vadd.f32 %v1901_v23, %v1479_v22  ;;  %2952 = vmatprep.mubr.msk.bf16.mxu0 %vm747_vm0, %v2098_v16 }
 0x324   : > { %v2043_v33 = vadd.f32 %v3002_v15, %v3919_v32  ;;  %2953 = vmatmul.mubr.msk.bf16.gmra.mrb[48].mxu0 %vm747_vm0, %v2099_v10  ;;  %v2074_v51 = vmax.f32 %v2042_v19, 0.0 }
 0x325   : > { %v2041_v49 = vadd.f32 %v3003_v20, %v3919_v32  ;;  %v2072_v3 = vmax.f32 %v2040_v11, 0.0 }
 0x326   : > { %v2075_v0 = vmax.f32 %v2043_v33, 0.0 }
 0x327   : > { %v2073_v21 = vmax.f32 %v2041_v49, 0.0  ;;  %v2926_v25 = vpop.f32.mrb[0].mxu1 }
 0x328   : > { %v2101_v13 = vpack.c.bf16 %v2075_v0, %v2074_v51  ;;  %v2046_v27 = vadd.f32 %v2926_v25, %v3919_v32  ;;  %v1914_v28 = vpop.f32.mrb[1].mxu1 }
 0x329   : > { %v2100_v29 = vpack.c.bf16 %v2073_v21, %v2072_v3  ;;  %v2044_v24 = vadd.f32 %v3919_v32, %v1914_v28  ;;  %v2927_v30 = vpop.f32.mrb[2].mxu1 }
 0x32a   : > { %v2047_v31 = vadd.f32 %v2927_v30, %v3919_v32  ;;  %v1917_v6 = vpop.f32.mrb[3].mxu1  ;;  %v2078_v22 = vmax.f32 %v2046_v27, 0.0 }
 0x32b   : > { %v2045_v9 = vadd.f32 %v3919_v32, %v1917_v6  ;;  %2956 = vmatprep.mubr.msk.bf16.mxu0 %vm747_vm0, %v2100_v29  ;;  %v2076_v35 = vmax.f32 %v2044_v24, 0.0 }
 0x32c   : > { %v2079_v26 = vmax.f32 %v2047_v31, 0.0  ;;  %2957 = vmatmul.mubr.msk.bf16.gmra.mrb[52].mxu0 %vm747_vm0, %v2101_v13 }
 0x32d   : > { %v2077_v36 = vmax.f32 %v2045_v9, 0.0  ;;  %v2339_v9 = vld [vmem:[%s3399_s25 + $0x10] sm:$0xff] }
 0x32e   : > { %v2103_v37 = vpack.c.bf16 %v2079_v26, %v2078_v22  ;;  %v2337_v22 = vld [vmem:[%s3399_s25] sm:$0xff] }
 0x32f   : > { %v2102_v38 = vpack.c.bf16 %v2077_v36, %v2076_v35  ;;  %v2930_v39 = vpop.f32.mrb[4].mxu1 }
 0x330   : > { %v2050_v40 = vadd.f32 %v2930_v39, %v3919_v32  ;;  %v1930_v41 = vpop.f32.mrb[5].mxu1 }
 0x331   : > { %v2048_v42 = vadd.f32 %v3919_v32, %v1930_v41  ;;  %v2931_v43 = vpop.f32.mrb[6].mxu1  ;;  %2960 = vmatprep.mubr.msk.bf16.mxu0 %vm747_vm0, %v2102_v38 }
 0x332   : > { %v2051_v44 = vadd.f32 %v2931_v43, %v3919_v32  ;;  %v1933_v45 = vpop.f32.mrb[7].mxu1  ;;  %v2082_v47 = vmax.f32 %v2050_v40, 0.0  ;;  %v2343_v43 = vld [vmem:[%s3399_s25 + $0x30] sm:$0xff] }
 0x333   : > { %v2049_v46 = vadd.f32 %v3919_v32, %v1933_v45  ;;  %v2080_v50 = vmax.f32 %v2048_v42, 0.0 }
 0x334   : > { %v2083_v48 = vmax.f32 %v2051_v44, 0.0  ;;  %2961 = vmatmul.mubr.msk.bf16.gmra.mrb[56].mxu0 %vm747_vm0, %v2103_v37  ;;  %v2338_v37 = vld [vmem:[%s3399_s25 + $0x8] sm:$0xff]  ;;  %v2341_v44 = vld [vmem:[%s3399_s25 + $0x20] sm:$0xff] }
 0x335   : > { %v2081_v52 = vmax.f32 %v2049_v46, 0.0  ;;  %v2344_v46 = vld [vmem:[%s3399_s25 + $0x38] sm:$0xff] }
 0x336   : > { %v2105_v53 = vpack.c.bf16 %v2083_v48, %v2082_v47 }
 0x337   : > { %v2104_v34 = vpack.c.bf16 %v2081_v52, %v2080_v50  ;;  %v2934_v54 = vpop.f32.mrb[8].mxu1  ;;  %v2342_v50 = vld [vmem:[%s3399_s25 + $0x28] sm:$0xff] }
 0x338   : > { %v2054_v55 = vadd.f32 %v2934_v54, %v3919_v32  ;;  %v1946_v56 = vpop.f32.mrb[9].mxu1 }
 0x339   : > { %v2052_v57 = vadd.f32 %v3919_v32, %v1946_v56  ;;  %v2935_v58 = vpop.f32.mrb[10].mxu1  ;;  %2964 = vmatprep.mubr.msk.bf16.mxu0 %vm747_vm0, %v2104_v34  ;;  %v2347_v56 = vld [vmem:[%s3399_s25 + $0x50] sm:$0xff] }
 0x33a   : > { %v2055_v59 = vadd.f32 %v2935_v58, %v3919_v32  ;;  %v1949_v60 = vpop.f32.mrb[11].mxu1  ;;  %v2086_v62 = vmax.f32 %v2054_v55, 0.0 }
 0x33b   : > { %v2053_v61 = vadd.f32 %v3919_v32, %v1949_v60  ;;  %v2084_v1 = vmax.f32 %v2052_v57, 0.0  ;;  %v2345_v57 = vld [vmem:[%s3399_s25 + $0x40] sm:$0xff] }
 0x33c   : > { %v2087_v63 = vmax.f32 %v2055_v59, 0.0  ;;  %2965 = vmatmul.mubr.msk.bf16.gmra.mrb[60].mxu0 %vm747_vm0, %v2105_v53  ;;  %v2348_v59 = vld [vmem:[%s3399_s25 + $0x58] sm:$0xff] }
 0x33d   : > { %v2085_v2 = vmax.f32 %v2053_v61, 0.0 }
 0x33e   : > { %v2107_v4 = vpack.c.bf16 %v2087_v63, %v2086_v62  ;;  %v2346_v62 = vld [vmem:[%s3399_s25 + $0x48] sm:$0xff] }
 0x33f   : > { %v2106_v5 = vpack.c.bf16 %v2085_v2, %v2084_v1  ;;  %v2938_v7 = vpop.f32.mrb[12].mxu1 }
 0x340   : > { %v2058_v8 = vadd.f32 %v2938_v7, %v3919_v32  ;;  %v1962_v10 = vpop.f32.mrb[13].mxu1  ;;  %v2351_v7 = vld [vmem:[%s3399_s25 + $0x70] sm:$0xff] }
 0x341   : > { %v2056_v12 = vadd.f32 %v3919_v32, %v1962_v10  ;;  %v2939_v14 = vpop.f32.mrb[14].mxu1  ;;  %2968 = vmatprep.mubr.msk.bf16.mxu0 %vm747_vm0, %v2106_v5 }
 0x342   : > { %v2059_v16 = vadd.f32 %v2939_v14, %v3919_v32  ;;  %v1965_v17 = vpop.f32.mrb[15].mxu1  ;;  %v2090_v19 = vmax.f32 %v2058_v8, 0.0  ;;  %v2349_v8 = vld [vmem:[%s3399_s25 + $0x60] sm:$0xff] }
 0x343   : > { %v2057_v18 = vadd.f32 %v3919_v32, %v1965_v17  ;;  %v2088_v23 = vmax.f32 %v2056_v12, 0.0  ;;  %v2352_v12 = vld [vmem:[%s3399_s25 + $0x78] sm:$0xff]  ;;  %v2350_v17 = vld [vmem:[%s3399_s25 + $0x68] sm:$0xff] }
 0x344   : > { %v2091_v15 = vmax.f32 %v2059_v16, 0.0  ;;  %2969 = vmatmul.mubr.msk.bf16.gmra.mrb[64].mxu0 %vm747_vm0, %v2107_v4 }
 0x345   : > { %v2089_v11 = vmax.f32 %v2057_v18, 0.0 }
 0x346   : > { %v2109_v20 = vpack.c.bf16 %v2091_v15, %v2090_v19 }
 0x347   : > { %v2108_v33 = vpack.c.bf16 %v2089_v11, %v2088_v23  ;;  %v2942_v49 = vpop.f32.mrb[16].mxu1 }
 0x348   : > { %v2062_v51 = vadd.f32 %v2942_v49, %v3919_v32  ;;  %v1978_v0 = vpop.f32.mrb[17].mxu1 }
 0x349   : > { %v2060_v3 = vadd.f32 %v3919_v32, %v1978_v0  ;;  %v2943_v21 = vpop.f32.mrb[18].mxu1  ;;  %2972 = vmatprep.mubr.msk.bf16.mxu0 %vm747_vm0, %v2108_v33  ;;  %v2353_v33 = vld [vmem:[%s3399_s25 + $0x80] sm:$0xff] }
 0x34a   : > { %v2063_v25 = vadd.f32 %v2943_v21, %v3919_v32  ;;  %v1981_v13 = vpop.f32.mrb[19].mxu1  ;;  %v2094_v28 = vmax.f32 %v2062_v51, 0.0  ;;  %v2356_v51 = vld [vmem:[%s3399_s25 + $0x98] sm:$0xff]  ;;  %v2354_v21 = vld [vmem:[%s3399_s25 + $0x88] sm:$0xff] }
 0x34b   : > { %v2061_v27 = vadd.f32 %v3919_v32, %v1981_v13  ;;  %v2092_v24 = vmax.f32 %v2060_v3, 0.0  ;;  %v2340_v32 = vld [vmem:[%s3399_s25 + $0x18] sm:$0xff] }
 0x34c   : > { %v2095_v29 = vmax.f32 %v2063_v25, 0.0  ;;  %2973 = vmatmul.mubr.msk.bf16.gmra.mrb[68].mxu0 %vm747_vm0, %v2109_v20  ;;  %v2355_v20 = vld [vmem:[%s3399_s25 + $0x90] sm:$0xff] }
 0x34d   : > { %v2093_v30 = vmax.f32 %v2061_v27, 0.0 }
 0x34e   : > { %v2111_v31 = vpack.c.bf16 %v2095_v29, %v2094_v28 }
 0x34f   : > { %v2110_v6 = vpack.c.bf16 %v2093_v30, %v2092_v24  ;;  %v2359_v24 = vld [vmem:[%s3399_s25 + $0xb0] sm:$0xff]  ;;  %v2357_v30 = vld [vmem:[%s3399_s25 + $0xa0] sm:$0xff] }
 0x351   : > { %2976 = vmatprep.mubr.msk.bf16.mxu0 %vm747_vm0, %v2110_v6  ;;  %v2360_v6 = vld [vmem:[%s3399_s25 + $0xb8] sm:$0xff] }
 0x354   : > { %2977 = vmatmul.mubr.msk.bf16.gmra.mrb[72].mxu0 %vm747_vm0, %v2111_v31 }
 0x3ef   : > { %v2950_v26 = vpop.f32.mrb[44].mxu0 }
 0x3f0   : > { %v2371_v35 = vadd.f32 %v2950_v26, %v2339_v9  ;;  %v2210_v36 = vpop.f32.mrb[45].mxu0  ;;  %v2358_v26 = vld [vmem:[%s3399_s25 + $0xa8] sm:$0xff] }
 0x3f1   : > { %v2369_v38 = vadd.f32 %v2337_v22, %v2210_v36  ;;  %v2951_v39 = vpop.f32.mrb[46].mxu0 }
 0x3f2   : > { %2403 = vst [vmem:[%s3975_s16 + $0x10] sm:$0xff] %v2371_v35  ;;  %v2372_v40 = vadd.f32 %v2951_v39, %v2340_v32  ;;  %v2213_v41 = vpop.f32.mrb[47].mxu0  ;;  %v2363_v39 = vld [vmem:[%s3399_s25 + $0xd0] sm:$0xff] }
 0x3f3   : > { %2401 = vst [vmem:[%s3975_s16] sm:$0xff] %v2369_v38  ;;  %v2370_v42 = vadd.f32 %v2338_v37, %v2213_v41 }
 0x3f4   : > { %2404 = vst [vmem:[%s3975_s16 + $0x18] sm:$0xff] %v2372_v40  ;;  %v2361_v40 = vld [vmem:[%s3399_s25 + $0xc0] sm:$0xff] }
 0x3f5   : > { %2402 = vst [vmem:[%s3975_s16 + $0x8] sm:$0xff] %v2370_v42  ;;  %v2364_v42 = vld [vmem:[%s3399_s25 + $0xd8] sm:$0xff] }
 0x3f7   : > { %v2954_v45 = vpop.f32.mrb[48].mxu0 }
 0x3f8   : > { %v2375_v47 = vadd.f32 %v2954_v45, %v2343_v43  ;;  %v2226_v48 = vpop.f32.mrb[49].mxu0  ;;  %v2362_v45 = vld [vmem:[%s3399_s25 + $0xc8] sm:$0xff] }
 0x3f9   : > { %v2373_v52 = vadd.f32 %v2341_v44, %v2226_v48  ;;  %v2955_v53 = vpop.f32.mrb[50].mxu0 }
 0x3fa   : > { %2407 = vst [vmem:[%s3975_s16 + $0x30] sm:$0xff] %v2375_v47  ;;  %v2376_v34 = vadd.f32 %v2955_v53, %v2344_v46  ;;  %v2229_v54 = vpop.f32.mrb[51].mxu0  ;;  %v2367_v53 = vld [vmem:[%s3399_s25 + $0xf0] sm:$0xff] }
 0x3fb   : > { %2405 = vst [vmem:[%s3975_s16 + $0x20] sm:$0xff] %v2373_v52  ;;  %v2374_v55 = vadd.f32 %v2342_v50, %v2229_v54 }
 0x3fc   : > { %2408 = vst [vmem:[%s3975_s16 + $0x38] sm:$0xff] %v2376_v34  ;;  %v2365_v34 = vld [vmem:[%s3399_s25 + $0xe0] sm:$0xff] }
 0x3fd   : > { %2406 = vst [vmem:[%s3975_s16 + $0x28] sm:$0xff] %v2374_v55  ;;  %v2368_v55 = vld [vmem:[%s3399_s25 + $0xf8] sm:$0xff] }
 0x3ff   : > { %v2958_v58 = vpop.f32.mrb[52].mxu0 }
 0x400   : > { %v2379_v60 = vadd.f32 %v2958_v58, %v2347_v56  ;;  %v2242_v61 = vpop.f32.mrb[53].mxu0  ;;  %v2366_v58 = vld [vmem:[%s3399_s25 + $0xe8] sm:$0xff]  ;;  %s3167_s25 = scalar_lea.vmem %s4041_s13, 4096 }
 0x401   : > { %v2377_v63 = vadd.f32 %v2345_v57, %v2242_v61  ;;  %v2959_v1 = vpop.f32.mrb[54].mxu0  ;;  %p3168_p6 = scmp.ne.s32.totalorder %s4041_s13, %s3167_s25  ;;  %p3175_p10 = scmp.lt.s32.totalorder %s3173_s12, %s3167_s25 }
 0x402   : > { %2411 = vst [vmem:[%s3975_s16 + $0x50] sm:$0xff] %v2379_v60  ;;  %v2380_v2 = vadd.f32 %v2959_v1, %v2348_v59  ;;  %v2245_v4 = vpop.f32.mrb[55].mxu0 }
 0x403   : > { %2409 = vst [vmem:[%s3975_s16 + $0x40] sm:$0xff] %v2377_v63  ;;  %v2378_v5 = vadd.f32 %v2346_v62, %v2245_v4  ;;  %p3169_p12 = pnand %p3168_p6, %p4103_p11  ;;  %p3176_p0 = por %p3175_p10, %p3174_p8 }
 0x404   : > { %2412 = vst [vmem:[%s3975_s16 + $0x58] sm:$0xff] %v2380_v2 }
 0x405   : > { %2410 = vst [vmem:[%s3975_s16 + $0x48] sm:$0xff] %v2378_v5  ;;  %p3170_p13 = pneg %p3169_p12 }
 0x407   : > { %v2962_v10 = vpop.f32.mrb[56].mxu0  ;;  %p3177_p2 = pnand %p3176_p0, %p3170_p13 }
 0x408   : > { %v2383_v14 = vadd.f32 %v2962_v10, %v2351_v7  ;;  %v2258_v16 = vpop.f32.mrb[57].mxu0 }
 0x409   : > { %v2381_v18 = vadd.f32 %v2349_v8, %v2258_v16  ;;  %v2963_v19 = vpop.f32.mrb[58].mxu0 }
 0x40a   : > { %2415 = vst [vmem:[%s3975_s16 + $0x70] sm:$0xff] %v2383_v14  ;;  %v2384_v15 = vadd.f32 %v2963_v19, %v2352_v12  ;;  %v2261_v23 = vpop.f32.mrb[59].mxu0 }
 0x40b   : > { %2413 = vst [vmem:[%s3975_s16 + $0x60] sm:$0xff] %v2381_v18  ;;  %v2382_v11 = vadd.f32 %v2350_v17, %v2261_v23 }
 0x40c   : > { %2416 = vst [vmem:[%s3975_s16 + $0x78] sm:$0xff] %v2384_v15 }
 0x40d   : > { %2414 = vst [vmem:[%s3975_s16 + $0x68] sm:$0xff] %v2382_v11 }
 0x40f   : > { %v2966_v49 = vpop.f32.mrb[60].mxu0 }
 0x410   : > { %v2387_v0 = vadd.f32 %v2966_v49, %v2355_v20  ;;  %v2274_v3 = vpop.f32.mrb[61].mxu0 }
 0x411   : > { %v2385_v25 = vadd.f32 %v2353_v33, %v2274_v3  ;;  %v2967_v13 = vpop.f32.mrb[62].mxu0 }
 0x412   : > { %2419 = vst [vmem:[%s3975_s16 + $0x90] sm:$0xff] %v2387_v0  ;;  %v2388_v27 = vadd.f32 %v2967_v13, %v2356_v51  ;;  %v2277_v28 = vpop.f32.mrb[63].mxu0 }
 0x413   : > { %2417 = vst [vmem:[%s3975_s16 + $0x80] sm:$0xff] %v2385_v25  ;;  %v2386_v29 = vadd.f32 %v2354_v21, %v2277_v28 }
 0x414   : > { %2420 = vst [vmem:[%s3975_s16 + $0x98] sm:$0xff] %v2388_v27 }
 0x415   : > { %2418 = vst [vmem:[%s3975_s16 + $0x88] sm:$0xff] %v2386_v29 }
 0x417   : > { %v2970_v31 = vpop.f32.mrb[64].mxu0 }
 0x418   : > { %v2391_v9 = vadd.f32 %v2970_v31, %v2359_v24  ;;  %v2290_v22 = vpop.f32.mrb[65].mxu0 }
 0x419   : > { %v2389_v32 = vadd.f32 %v2357_v30, %v2290_v22  ;;  %v2971_v35 = vpop.f32.mrb[66].mxu0 }
 0x41a   : > { %2423 = vst [vmem:[%s3975_s16 + $0xb0] sm:$0xff] %v2391_v9  ;;  %v2392_v36 = vadd.f32 %v2971_v35, %v2360_v6  ;;  %v2293_v37 = vpop.f32.mrb[67].mxu0 }
 0x41b   : > { %2421 = vst [vmem:[%s3975_s16 + $0xa0] sm:$0xff] %v2389_v32  ;;  %v2390_v38 = vadd.f32 %v2358_v26, %v2293_v37 }
 0x41c   : > { %2424 = vst [vmem:[%s3975_s16 + $0xb8] sm:$0xff] %v2392_v36 }
 0x41d   : > { %2422 = vst [vmem:[%s3975_s16 + $0xa8] sm:$0xff] %v2390_v38 }
 0x41f   : > { %v2974_v41 = vpop.f32.mrb[68].mxu0 }
 0x420   : > { %v2395_v43 = vadd.f32 %v2974_v41, %v2363_v39  ;;  %v2306_v44 = vpop.f32.mrb[69].mxu0 }
 0x421   : > { %v2393_v46 = vadd.f32 %v2361_v40, %v2306_v44  ;;  %v2975_v47 = vpop.f32.mrb[70].mxu0 }
 0x422   : > { %2427 = vst [vmem:[%s3975_s16 + $0xd0] sm:$0xff] %v2395_v43  ;;  %v2396_v48 = vadd.f32 %v2975_v47, %v2364_v42  ;;  %v2309_v50 = vpop.f32.mrb[71].mxu0 }
 0x423   : > { %2425 = vst [vmem:[%s3975_s16 + $0xc0] sm:$0xff] %v2393_v46  ;;  %v2394_v52 = vadd.f32 %v2362_v45, %v2309_v50 }
 0x424   : > { %2428 = vst [vmem:[%s3975_s16 + $0xd8] sm:$0xff] %v2396_v48 }
 0x425   : > { %2426 = vst [vmem:[%s3975_s16 + $0xc8] sm:$0xff] %v2394_v52 }
 0x427   : > { %v2978_v54 = vpop.f32.mrb[72].mxu0 }
 0x428   : > { %v2399_v56 = vadd.f32 %v2978_v54, %v2367_v53  ;;  %v2322_v57 = vpop.f32.mrb[73].mxu0 }
 0x429   : > { %v2397_v59 = vadd.f32 %v2365_v34, %v2322_v57  ;;  %v2979_v60 = vpop.f32.mrb[74].mxu0 }
 0x42a   : > { %2431 = vst [vmem:[%s3975_s16 + $0xf0] sm:$0xff] %v2399_v56  ;;  %v2400_v61 = vadd.f32 %v2979_v60, %v2368_v55  ;;  %v2325_v62 = vpop.f32.mrb[75].mxu0 }
 0x42b   : > { %2429 = vst [vmem:[%s3975_s16 + $0xe0] sm:$0xff] %v2397_v59  ;;  %v2398_v63 = vadd.f32 %v2366_v58, %v2325_v62 }
 0x42c   : > { %2432 = vst [vmem:[%s3975_s16 + $0xf8] sm:$0xff] %v2400_v61 }
 0x42d   : > { %2430 = vst [vmem:[%s3975_s16 + $0xe8] sm:$0xff] %v2398_v63 }
 0x42e   : > { %3180 = shalt.err (!%p3177_p2)
}
 0x42f   : > { %s3181_s20 = scalar_lea.hbm %s4039_s24, 4096  ;;  %s3185_s23 = scalar_lea.hbm %s4096_s8, 8192 }
 0x430   : > { %p3182_p4 = scmp.ne.s32.totalorder %s4039_s24, %s3181_s20  ;;  %p3186_p9 = scmp.lt.u32.totalorder %s4039_s24, %s4096_s8 }
 0x431   : > { %p3187_p1 = scmp.lt.u32.totalorder %s3185_s23, %s3181_s20  ;;  %p3189_p6 = scmp.lt.u32.totalorder %s3181_s20, %s4039_s24 }
 0x432   : > { %p3183_p5 = pnand %p3182_p4, %p4103_p11 }
 0x433   : > { %p3188_p3 = por %p3187_p1, %p3186_p9 }
 0x434   : > { %p3184_p7 = pneg %p3183_p5 }
 0x435   : > { %p3190_p12 = por %p3189_p6, %p3188_p3 }
 0x437   : > { %p3191_p13 = pnand %p3190_p12, %p3184_p7 }
 0x439   : > { %3194 = shalt.err (!%p3191_p13)
}
 0x43a   : > { %s3242_s25 = smov 128   ;;  %s3243_s26 = smov 8  }
 0x43b   : > { %3058 = dma.vmem_to_hbm [thread:$0]  (%p4103_p11), %s4041_s13, 4096, %s4039_s24, %s2434_s9, %s3242_s25, %s3242_s25, %s3243_s26  }
 0x43c PF: > { %s2462_s10 = sand.u32 1, %s3221_s27   ;;  %p4104_p8 = scmp.ne.s32.totalorder %s4101_s18, 0 }
 0x43d   : > { %p4105_p10 = scmp.ge.s32.totalorder %s3233_s30, 2  ;;  %s2463_s12 = scalar_lea.sflag [#allocation5], %s2462_s10 }
 0x43f   : > { %p3065_p0 = pnand %p4105_p10, %p4104_p8 }
 0x441   : > { %3216 = dma.done.wait (!%p3065_p0), %s2463_s12, 4096  }
 0x442   : > { %3218 = vsyncadd (!%p3065_p0), %s2463_s12, 4294963200  ;;  %p21_p2 = scmp.ge.s32.totalorder %s3314_s11, 4   ;;  %s4106_s27 = smov %s3225_s28 }
 0x443   : > { %s4107_s28 = smov %s3229_s29  ;;  %s4108_s29 = smov %s3326_s14 }
 0x444   : > { %s4109_s30 = smov %s3314_s11  ;;  %23 = sbr.rel (!%p21_p2) target bundleno = 5 (0x5), region = 101 }
 0x44b   :  { %2468 = vsyncpa [#allocation4], 1 }
 0x44c   :  { %2470 = vsyncpa [#allocation4 + $0x1], 1 }
 0x44d   :  { %2471 = vsyncpa [#allocation5], 1 }
 0x44e   :  { %2473 = vsyncpa [#allocation5 + $0x1], 1 }

</bundles_post_ra>
